<compile_context>
chip_gen: v7x
topology: tpu7x:2x2x1
jax: 0.10.0
libtpu: 0.0.40
codegen_flags: <defaults>
</compile_context>

<pallas_src>
import jax
import jax.numpy as jnp
import numpy as np
from jax.experimental import pallas as pl
from jax.experimental.pallas import tpu as pltpu


_BLOCK_B = 1024          # TB: pairs scored per grid step (= 8 sublanes x 128 lanes).
_LANES = 128
_SUBLANES = 8
_MAX_ONEHOT_ROWS = 2048  # one-hot MXU gather only pays off for small tables.


def _wmf_forward_kernel(u_idx_ref, i_idx_ref, u_tab_ref, i_tab_ref, o_ref):
    # u_idx_ref, i_idx_ref : VMEM int32[1, 1, TB]    (this step's index block)
    # u_tab_ref            : VMEM f32[NU, D]         (full user table, resident)
    # i_tab_ref            : VMEM f32[NI, D]         (full item table, resident)
    # o_ref                : VMEM f32[TB//128, 128]  (this step's ratings, (8,128) tile)
    nu, d = u_tab_ref.shape
    ni, _ = i_tab_ref.shape
    tb = u_idx_ref.shape[-1]
    block_rows = o_ref.shape[0]

    u_idx = u_idx_ref[0]          # (1, TB) int32
    i_idx = i_idx_ref[0]          # (1, TB) int32

    # In-kernel gather of TB rows from each VMEM-resident table via a one-hot
    # matmul on the MXU (no per-row DMAs, no scalar loops).  Result layout is
    # lane-dense (D, TB): contract the table's row dim against the one-hot.
    iota_u = jax.lax.broadcasted_iota(jnp.int32, (nu, tb), 0)
    iota_i = jax.lax.broadcasted_iota(jnp.int32, (ni, tb), 0)
    onehot_u = (iota_u == u_idx).astype(jnp.float32)   # (NU, TB)
    onehot_i = (iota_i == i_idx).astype(jnp.float32)   # (NI, TB)

    contract_rows = (((0,), (0,)), ((), ()))           # table^T @ onehot
    u_emb = jax.lax.dot_general(u_tab_ref[...], onehot_u, contract_rows,
                                preferred_element_type=jnp.float32)   # (D, TB)
    i_emb = jax.lax.dot_general(i_tab_ref[...], onehot_i, contract_rows,
                                preferred_element_type=jnp.float32)   # (D, TB)

    prod = u_emb * i_emb                               # (D, TB), full vregs

    # Reduce over D on the MXU: (1, D) @ (D, TB) -> lane-dense (1, TB) logits.
    ones_row = jnp.ones((1, d), jnp.float32)
    reduce_d = (((1,), (0,)), ((), ()))
    logits = jax.lax.dot_general(ones_row, prod, reduce_d,
                                 preferred_element_type=jnp.float32)  # (1, TB)

    rating = jax.nn.sigmoid(logits)                    # (1, TB)

    # Place the 128-lane chunks of the (1, TB) ratings row into the sublanes
    # of the (block_rows, 128) output tile.  Static, 128-aligned lane slices;
    # no cross-tile reshape needed.  The HBM writeback is one dense tile DMA.
    for r in range(block_rows):
        o_ref[r:r + 1, :] = rating[:, r * _LANES:(r + 1) * _LANES]


def wmf_forward(user_table, item_table, user_indices, item_indices,
                *, block_b=_BLOCK_B):
    """Pallas implementation of WMF.forward.

    user_table: f32[num_users, dim]
    item_table: f32[num_items, dim]
    user_indices, item_indices: int32[B]
    returns: f32[B]
    """
    num_users, d = user_table.shape
    num_items, d2 = item_table.shape
    assert d == d2
    b = user_indices.shape[0]
    assert item_indices.shape[0] == b
    assert block_b % (_SUBLANES * _LANES) == 0

    user_table = user_table.astype(jnp.float32)
    item_table = item_table.astype(jnp.float32)

    # --- Generation-aware VMEM budgeting ------------------------------------
    try:
        vmem_cap = int(pltpu.get_tpu_info().vmem_capacity_bytes)
    except Exception:
        vmem_cap = 64 * 1024 * 1024   # conservative: v7x has 64 MiB per TensorCore

    table_bytes = (num_users + num_items) * d * 4
    work_bytes = ((num_users + num_items) * block_b * 4      # one-hot temporaries
                  + 3 * d * block_b * 4                      # u_emb, i_emb, prod
                  + 2 * 2 * block_b * 4                      # idx blocks (dbl-buffered)
                  + 2 * block_b * 4)                         # output blocks
    est_bytes = table_bytes + work_bytes

    # The one-hot MXU gather does O((NU+NI)*TB) work per step; only use it for
    # genuinely small, VMEM-resident tables.
    if (num_users > _MAX_ONEHOT_ROWS or num_items > _MAX_ONEHOT_ROWS
            or est_bytes > int(0.45 * vmem_cap)):
        # TODO(synk): add an HBM-resident gather path (scalar-prefetched indices
        # driving per-row DMA gathers) for production-sized embedding tables.
        raise NotImplementedError(
            "embedding tables too large for the VMEM-resident one-hot path")

    vmem_limit = min(int(0.9 * vmem_cap), max(32 * 1024 * 1024, 2 * est_bytes))

    block_rows = block_b // _LANES
    num_blocks = pl.cdiv(b, block_b)
    b_pad = num_blocks * block_b

    # Clamp indices (nn.Embedding would reject OOB; clamping is a documented
    # semantic difference) and pad the batch to whole blocks; the padded tail
    # (index 0) is computed and discarded.
    def prep(idx, hi):
        idx = jnp.clip(idx.astype(jnp.int32), 0, hi - 1)
        idx = jnp.pad(idx, (0, b_pad - b))
        return idx.reshape(num_blocks, 1, block_b)

    u_idx = prep(user_indices, num_users)
    i_idx = prep(item_indices, num_items)

    # Resident tables: constant index_map, single-buffered when supported.
    def table_spec(rows):
        index_map = lambda i: (0, 0)
        if hasattr(pl, "Buffered"):
            try:
                return pl.BlockSpec((rows, d), index_map,
                                    pipeline_mode=pl.Buffered(1))
            except Exception:
                pass
        return pl.BlockSpec((rows, d), index_map)

    grid_spec = pltpu.PrefetchScalarGridSpec(
        num_scalar_prefetch=0,
        grid=(num_blocks,),
        in_specs=[
            pl.BlockSpec((1, 1, block_b), lambda i: (i, 0, 0)),   # user idx block
            pl.BlockSpec((1, 1, block_b), lambda i: (i, 0, 0)),   # item idx block
            table_spec(num_users),                                # full user table
            table_spec(num_items),                                # full item table
        ],
        # (8,128)-aligned, lane-dense output: one (block_rows, 128) tile/step.
        out_specs=pl.BlockSpec((block_rows, _LANES), lambda i: (i, 0)),
    )

    flops = 2 * (num_users + num_items + 1) * d * block_b * num_blocks
    cost = pl.CostEstimate(
        flops=int(flops),
        transcendentals=int(b_pad),
        bytes_accessed=int(table_bytes + 2 * b_pad * 4 + b_pad * 4),
    )

    out = pl.pallas_call(
        _wmf_forward_kernel,
        out_shape=jax.ShapeDtypeStruct((num_blocks * block_rows, _LANES),
                                       jnp.float32),
        grid_spec=grid_spec,
        compiler_params=pltpu.CompilerParams(
            dimension_semantics=("parallel",),   # each step owns its output tile
            vmem_limit_bytes=int(vmem_limit),
        ),
        cost_estimate=cost,
    )(u_idx, i_idx, user_table, item_table)

    return out.reshape(b_pad)[:b]


if __name__ == "__main__":
    # Small shapes consistent with the module's __init__.
    num_users, num_items, dim = 64, 128, 32
    batch = 500  # not a multiple of 1024 -> exercises padding; single grid step

    key = jax.random.PRNGKey(0)
    k_u, k_i, k_ui, k_ii = jax.random.split(key, 4)

    # nn.Embedding default init is N(0, 1); the module then scales by 0.1.
    user_table = (jax.random.normal(k_u, (num_users, dim)) * 0.1).astype(jnp.float32)
    item_table = (jax.random.normal(k_i, (num_items, dim)) * 0.1).astype(jnp.float32)

    # Note: affine_output (nn.Linear(dim, 1)) exists in the module but is not
    # used by forward(), so it is intentionally not materialized here.

    user_indices = jax.random.randint(k_ui, (batch,), 0, num_users, dtype=jnp.int32)
    item_indices = jax.random.randint(k_ii, (batch,), 0, num_items, dtype=jnp.int32)

    rating = wmf_forward(user_table, item_table, user_indices, item_indices)
    rating = jax.block_until_ready(rating)

    # Pure-JAX reference.
    u_emb = jnp.take(user_table, user_indices, axis=0)
    i_emb = jnp.take(item_table, item_indices, axis=0)
    ref = jax.nn.sigmoid(jnp.sum(u_emb * i_emb, axis=1))

    np.testing.assert_allclose(np.asarray(rating), np.asarray(ref),
                               rtol=1e-5, atol=1e-6)
    print("KERNEL_OK")
</pallas_src>

<mosaic_0001>
module attributes {stable_mosaic.version = 11 : i64} {
  func.func @_wmf_forward_kernel(%arg0: i32, %arg1: memref<1x1x1024xi32, #tpu.memory_space<vmem>>, %arg2: memref<1x1x1024xi32, #tpu.memory_space<vmem>>, %arg3: memref<64x32xf32, #tpu.memory_space<vmem>>, %arg4: memref<128x32xf32, #tpu.memory_space<vmem>>, %arg5: memref<8x128xf32, #tpu.memory_space<vmem>>) attributes {dimension_semantics = [#tpu.dimension_semantics<parallel>], iteration_bounds = array<i64: 1>, scalar_prefetch = 0 : i64, scratch_operands = 0 : i64, tpu.core_type = #tpu.core_type<tc>, window_params = [{transform_indices = @transform_0, window_bounds = array<i64: 1, 1, 1024>}, {transform_indices = @transform_1, window_bounds = array<i64: 1, 1, 1024>}, {pipeline_mode = #tpu.pipeline_mode<synchronous>, transform_indices = @transform_2, window_bounds = array<i64: 64, 32>}, {pipeline_mode = #tpu.pipeline_mode<synchronous>, transform_indices = @transform_3, window_bounds = array<i64: 128, 32>}, {transform_indices = @transform_4, window_bounds = array<i64: 8, 128>}]} {
    %c0 = arith.constant 0 : index
    %c0_0 = arith.constant 0 : index
    %c0_1 = arith.constant 0 : index
    %0 = vector.load %arg1[%c0, %c0_0, %c0_1] : memref<1x1x1024xi32, #tpu.memory_space<vmem>>, vector<1x1x1024xi32>
    %1 = vector.shape_cast %0 : vector<1x1x1024xi32> to vector<1x1024xi32>
    %c0_2 = arith.constant 0 : index
    %c0_3 = arith.constant 0 : index
    %c0_4 = arith.constant 0 : index
    %2 = vector.load %arg2[%c0_2, %c0_3, %c0_4] : memref<1x1x1024xi32, #tpu.memory_space<vmem>>, vector<1x1x1024xi32>
    %3 = vector.shape_cast %2 : vector<1x1x1024xi32> to vector<1x1024xi32>
    %4 = tpu.iota {dimensions = array<i32: 0>} : vector<64x1024xi32>
    %5 = tpu.iota {dimensions = array<i32: 0>} : vector<128x1024xi32>
    %6 = vector.broadcast %1 : vector<1x1024xi32> to vector<64x1024xi32>
    %7 = arith.cmpi eq, %4, %6 : vector<64x1024xi32>
    %8 = arith.extui %7 : vector<64x1024xi1> to vector<64x1024xi32>
    %9 = arith.sitofp %8 : vector<64x1024xi32> to vector<64x1024xf32>
    %10 = vector.broadcast %3 : vector<1x1024xi32> to vector<128x1024xi32>
    %11 = arith.cmpi eq, %5, %10 : vector<128x1024xi32>
    %12 = arith.extui %11 : vector<128x1024xi1> to vector<128x1024xi32>
    %13 = arith.sitofp %12 : vector<128x1024xi32> to vector<128x1024xf32>
    %c0_5 = arith.constant 0 : index
    %c0_6 = arith.constant 0 : index
    %14 = vector.load %arg3[%c0_5, %c0_6] : memref<64x32xf32, #tpu.memory_space<vmem>>, vector<64x32xf32>
    %cst = arith.constant dense<0.000000e+00> : vector<32x1024xf32>
    %15 = tpu.matmul %14, %9, %cst {dimension_numbers = #tpu.dot_dimension_numbers<[0], [0], [1], [1], [0, 1, 1, 1], [], []>} : vector<64x32xf32>, vector<64x1024xf32>, vector<32x1024xf32> -> vector<32x1024xf32>
    %c0_7 = arith.constant 0 : index
    %c0_8 = arith.constant 0 : index
    %16 = vector.load %arg4[%c0_7, %c0_8] : memref<128x32xf32, #tpu.memory_space<vmem>>, vector<128x32xf32>
    %cst_9 = arith.constant dense<0.000000e+00> : vector<32x1024xf32>
    %17 = tpu.matmul %16, %13, %cst_9 {dimension_numbers = #tpu.dot_dimension_numbers<[0], [0], [1], [1], [0, 1, 1, 1], [], []>} : vector<128x32xf32>, vector<128x1024xf32>, vector<32x1024xf32> -> vector<32x1024xf32>
    %18 = arith.mulf %15, %17 : vector<32x1024xf32>
    %cst_10 = arith.constant 1.000000e+00 : f32
    %19 = vector.broadcast %cst_10 : f32 to vector<1x32xf32>
    %cst_11 = arith.constant dense<0.000000e+00> : vector<1x1024xf32>
    %20 = tpu.matmul %19, %18, %cst_11 {dimension_numbers = #tpu.dot_dimension_numbers<[1], [0], [0], [1], [0, 0, 1, 1], [], []>} : vector<1x32xf32>, vector<32x1024xf32>, vector<1x1024xf32> -> vector<1x1024xf32>
    %21 = arith.negf %20 : vector<1x1024xf32>
    %22 = math.exp %21 : vector<1x1024xf32>
    %cst_12 = arith.constant 1.000000e+00 : f32
    %23 = vector.broadcast %cst_12 : f32 to vector<1x1024xf32>
    %24 = arith.addf %23, %22 : vector<1x1024xf32>
    %25 = arith.divf %23, %24 : vector<1x1024xf32>
    %26 = vector.extract_strided_slice %25 {offsets = [0, 0], sizes = [1, 128], strides = [1, 1]} : vector<1x1024xf32> to vector<1x128xf32>
    %c0_13 = arith.constant 0 : index
    %c0_14 = arith.constant 0 : index
    %27 = vector.load %arg5[%c0_13, %c0_14] : memref<8x128xf32, #tpu.memory_space<vmem>>, vector<1x128xf32>
    tpu.vector_store %arg5[%c0_13, %c0_14], %26 {strides = array<i32>} : memref<8x128xf32, #tpu.memory_space<vmem>>, vector<1x128xf32>,
    %28 = vector.extract_strided_slice %25 {offsets = [0, 128], sizes = [1, 128], strides = [1, 1]} : vector<1x1024xf32> to vector<1x128xf32>
    %c1 = arith.constant 1 : index
    %c0_15 = arith.constant 0 : index
    %29 = vector.load %arg5[%c1, %c0_15] : memref<8x128xf32, #tpu.memory_space<vmem>>, vector<1x128xf32>
    tpu.vector_store %arg5[%c1, %c0_15], %28 {strides = array<i32>} : memref<8x128xf32, #tpu.memory_space<vmem>>, vector<1x128xf32>,
    %30 = vector.extract_strided_slice %25 {offsets = [0, 256], sizes = [1, 128], strides = [1, 1]} : vector<1x1024xf32> to vector<1x128xf32>
    %c2 = arith.constant 2 : index
    %c0_16 = arith.constant 0 : index
    %31 = vector.load %arg5[%c2, %c0_16] : memref<8x128xf32, #tpu.memory_space<vmem>>, vector<1x128xf32>
    tpu.vector_store %arg5[%c2, %c0_16], %30 {strides = array<i32>} : memref<8x128xf32, #tpu.memory_space<vmem>>, vector<1x128xf32>,
    %32 = vector.extract_strided_slice %25 {offsets = [0, 384], sizes = [1, 128], strides = [1, 1]} : vector<1x1024xf32> to vector<1x128xf32>
    %c3 = arith.constant 3 : index
    %c0_17 = arith.constant 0 : index
    %33 = vector.load %arg5[%c3, %c0_17] : memref<8x128xf32, #tpu.memory_space<vmem>>, vector<1x128xf32>
    tpu.vector_store %arg5[%c3, %c0_17], %32 {strides = array<i32>} : memref<8x128xf32, #tpu.memory_space<vmem>>, vector<1x128xf32>,
    %34 = vector.extract_strided_slice %25 {offsets = [0, 512], sizes = [1, 128], strides = [1, 1]} : vector<1x1024xf32> to vector<1x128xf32>
    %c4 = arith.constant 4 : index
    %c0_18 = arith.constant 0 : index
    %35 = vector.load %arg5[%c4, %c0_18] : memref<8x128xf32, #tpu.memory_space<vmem>>, vector<1x128xf32>
    tpu.vector_store %arg5[%c4, %c0_18], %34 {strides = array<i32>} : memref<8x128xf32, #tpu.memory_space<vmem>>, vector<1x128xf32>,
    %36 = vector.extract_strided_slice %25 {offsets = [0, 640], sizes = [1, 128], strides = [1, 1]} : vector<1x1024xf32> to vector<1x128xf32>
    %c5 = arith.constant 5 : index
    %c0_19 = arith.constant 0 : index
    %37 = vector.load %arg5[%c5, %c0_19] : memref<8x128xf32, #tpu.memory_space<vmem>>, vector<1x128xf32>
    tpu.vector_store %arg5[%c5, %c0_19], %36 {strides = array<i32>} : memref<8x128xf32, #tpu.memory_space<vmem>>, vector<1x128xf32>,
    %38 = vector.extract_strided_slice %25 {offsets = [0, 768], sizes = [1, 128], strides = [1, 1]} : vector<1x1024xf32> to vector<1x128xf32>
    %c6 = arith.constant 6 : index
    %c0_20 = arith.constant 0 : index
    %39 = vector.load %arg5[%c6, %c0_20] : memref<8x128xf32, #tpu.memory_space<vmem>>, vector<1x128xf32>
    tpu.vector_store %arg5[%c6, %c0_20], %38 {strides = array<i32>} : memref<8x128xf32, #tpu.memory_space<vmem>>, vector<1x128xf32>,
    %40 = vector.extract_strided_slice %25 {offsets = [0, 896], sizes = [1, 128], strides = [1, 1]} : vector<1x1024xf32> to vector<1x128xf32>
    %c7 = arith.constant 7 : index
    %c0_21 = arith.constant 0 : index
    %41 = vector.load %arg5[%c7, %c0_21] : memref<8x128xf32, #tpu.memory_space<vmem>>, vector<1x128xf32>
    tpu.vector_store %arg5[%c7, %c0_21], %40 {strides = array<i32>} : memref<8x128xf32, #tpu.memory_space<vmem>>, vector<1x128xf32>,
    return
  }
  func.func @transform_0(%arg0: i32) -> (i32, i32, i32) {
    %c0_i32 = arith.constant 0 : i32
    %c0_i32_0 = arith.constant 0 : i32
    %c0_i32_1 = arith.constant 0 : i32
    return %arg0, %c0_i32, %c0_i32_0 : i32, i32, i32
  }
  func.func @transform_1(%arg0: i32) -> (i32, i32, i32) {
    %c0_i32 = arith.constant 0 : i32
    %c0_i32_0 = arith.constant 0 : i32
    %c0_i32_1 = arith.constant 0 : i32
    return %arg0, %c0_i32, %c0_i32_0 : i32, i32, i32
  }
  func.func @transform_2(%arg0: i32) -> (i32, i32) {
    %c0_i32 = arith.constant 0 : i32
    %c0_i32_0 = arith.constant 0 : i32
    %c0_i32_1 = arith.constant 0 : i32
    return %c0_i32, %c0_i32_0 : i32, i32
  }
  func.func @transform_3(%arg0: i32) -> (i32, i32) {
    %c0_i32 = arith.constant 0 : i32
    %c0_i32_0 = arith.constant 0 : i32
    %c0_i32_1 = arith.constant 0 : i32
    return %c0_i32, %c0_i32_0 : i32, i32
  }
  func.func @transform_4(%arg0: i32) -> (i32, i32) {
    %c0_i32 = arith.constant 0 : i32
    %c0_i32_0 = arith.constant 0 : i32
    return %arg0, %c0_i32 : i32, i32
  }
}

</mosaic_0001>

<bundles_post_ra>
// kernel: tpu_custom_call.1
= control target key start
LH: loop header
LB: loop body
LE: loop exit
PB: predicated region body
PF: predicated region fallthrough
CT: control target
= control target key end

     0   :  { %v20_v1 = vlaneseq  ;;  %v4358_v2 = vmov 0.0   ;;  %s4353_s0 = inlined_call_operand.vmem [shape: s32[1,1,1024], index: 0, kind: input, shape index: {}]   ;;  %s4354_s1 = inlined_call_operand.vmem [shape: s32[1,1,1024], index: 1, kind: input, shape index: {}]   ;;  %s4355_s2 = inlined_call_operand.vmem [shape: f32[64,32], index: 2, kind: input, shape index: {}]   ;;  %s4356_s3 = inlined_call_operand.vmem [shape: f32[128,32], index: 3, kind: input, shape index: {}]   ;;  %s4357_s4 = inlined_call_operand.hbm [shape: f32[8,128], index: 4, kind: output, shape index: {}]  }
   0x1   :  { %v677_v0 = vld [vmem:[%s4355_s2] sm:$0xff]  ;;  %794 = vmatprep.mubr.f32.mxu0 %v4358_v2  ;;  %v678_v3 = vld [vmem:[%s4355_s2 + $0x8] sm:$0xff]  ;;  %883 = vmatprep.mubr.f32.mxu1 %v4358_v2  ;;  %v679_v9 = vld [vmem:[%s4355_s2 + $0x10] sm:$0xff] }
   0x2   :  { %685 = vxpose.xlu0.b32.start [1/8] (short) (narrow) %v677_v0, 32  ;;  %v1086_v4 = vld [vmem:[%s4356_s3] sm:$0xff]  ;;  %v2615_v5 = vshrl.u32 %v20_v1, 7  ;;  %v1087_v6 = vld [vmem:[%s4356_s3 + $0x8] sm:$0xff]  ;;  %v1088_v12 = vld [vmem:[%s4356_s3 + $0x10] sm:$0xff] }
   0x3   :  { %1102 = vxpose.xlu1.b32.start [1/16] (narrow) %v1086_v4, 32  ;;  %v2637_v14 = vld [vmem:[%s4353_s0] sm:$0xff] }
   0x4   :  { %v43_v7 = vsub.s32 1, %v2615_v5  ;;  %v51_v8 = vsub.s32 3, %v2615_v5  ;;  %v39_v10 = vsub.s32 0, %v2615_v5  ;;  %v47_v11 = vsub.s32 2, %v2615_v5  ;;  %v2642_v15 = vld [vmem:[%s4354_s1] sm:$0xff] }
   0x5   :  { %v2632_v13 = vadd.s32 8, %v2615_v5  ;;  %v2645_v16 = vadd.s32 16, %v2615_v5  ;;  %v2648_v17 = vadd.s32 24, %v2615_v5  ;;  %v2651_v18 = vadd.s32 32, %v2615_v5 }
   0x6   :  { %686 = vxpose.xlu0.b32.cont [2/8] (short) (narrow) %v678_v3, 32  ;;  %v2654_v19 = vadd.s32 40, %v2615_v5  ;;  %v2657_v20 = vrot.slane %v2637_v14, %v43_v7  ;;  %v2660_v21 = vrot.slane %v2637_v14, %v51_v8  ;;  %v2663_v22 = vadd.s32 48, %v2615_v5 }
   0x7   :  { %1103 = vxpose.xlu1.b32.cont [2/16] (narrow) %v1087_v6, 32  ;;  %v2666_v23 = vadd.s32 56, %v2615_v5 }
   0xa   :  { %687 = vxpose.xlu0.b32.cont [3/8] (short) (narrow) %v679_v9, 32 }
   0xb   :  { %9 = vsyncpa [#allocation3], 0  ;;  %v680_v24 = vld [vmem:[%s4355_s2 + $0x18] sm:$0xff]  ;;  %v2672_v25 = vrot.slane %v2642_v15, %v43_v7  ;;  %v2675_v26 = vrot.slane %v2637_v14, %v39_v10  ;;  %v2678_v27 = vrot.slane %v2637_v14, %v47_v11  ;;  %v59_v28 = vsub.s32 5, %v2615_v5  ;;  %1104 = vxpose.xlu1.b32.cont [3/16] (narrow) %v1088_v12, 32  ;;  %v681_v33 = vld [vmem:[%s4355_s2 + $0x20] sm:$0xff] }
   0xc   :  { %vm70_vm0 = vcmp.eq.s32.totalorder %v2615_v5, %v2657_v20  ;;  %vm78_vm1 = vcmp.eq.s32.totalorder %v2632_v13, %v2657_v20  ;;  %vm72_vm2 = vcmp.eq.s32.totalorder %v2615_v5, %v2660_v21  ;;  %vm80_vm3 = vcmp.eq.s32.totalorder %v2632_v13, %v2660_v21  ;;  %v1089_v29 = vld [vmem:[%s4356_s3 + $0x18] sm:$0xff]  ;;  %v1090_v37 = vld [vmem:[%s4356_s3 + $0x20] sm:$0xff]  ;;  %v682_v39 = vld [vmem:[%s4355_s2 + $0x28] sm:$0xff] }
   0xd   :  { %vm2292_vm4 = vmpackc.low %vm78_vm1, %vm70_vm0  ;;  %vm69_vm5 = vcmp.eq.s32.totalorder %v2615_v5, %v2675_v26  ;;  %vm77_vm6 = vcmp.eq.s32.totalorder %v2632_v13, %v2675_v26  ;;  %vm71_vm7 = vcmp.eq.s32.totalorder %v2615_v5, %v2678_v27  ;;  %vm79_vm8 = vcmp.eq.s32.totalorder %v2632_v13, %v2678_v27  ;;  %v1091_v40 = vld [vmem:[%s4356_s3 + $0x28] sm:$0xff]  ;;  %v683_v45 = vld [vmem:[%s4355_s2 + $0x30] sm:$0xff] }
   0xe   :  { %688 = vxpose.xlu0.b32.cont [4/8] (short) (narrow) %v680_v24, 32  ;;  %v4360_v30 = vmov 1.0|1.0   ;;  %v2702_v31 = vrot.slane %v2642_v15, %v51_v8  ;;  %vm2308_vm9 = vmpackc.low %vm80_vm3, %vm72_vm2  ;;  %vm86_vm10 = vcmp.eq.s32.totalorder %v2645_v16, %v2657_v20  ;;  %vm94_vm11 = vcmp.eq.s32.totalorder %v2648_v17, %v2657_v20  ;;  %v1092_v47 = vld [vmem:[%s4356_s3 + $0x30] sm:$0xff]  ;;  %v684_v48 = vld [vmem:[%s4355_s2 + $0x38] sm:$0xff] }
   0xf   :  { %2293 = vmatprep.subr.msk.bf16.mxu0 %vm2292_vm4, %v4360_v30  ;;  %v67_v32 = vsub.s32 7, %v2615_v5  ;;  %2309 = vmatprep.subr.msk.bf16.mxu1 %vm2308_vm9, %v4360_v30  ;;  %v2714_v34 = vrot.slane %v2642_v15, %v39_v10  ;;  %vm2294_vm12 = vmpackc.low %vm77_vm6, %vm69_vm5  ;;  %v2720_v35 = vrot.slane %v2642_v15, %v47_v11  ;;  %vm88_vm13 = vcmp.eq.s32.totalorder %v2645_v16, %v2660_v21  ;;  %v1093_v49 = vld [vmem:[%s4356_s3 + $0x38] sm:$0xff]  ;;  %v1094_v52 = vld [vmem:[%s4356_s3 + $0x40] sm:$0xff] }
  0x10   :  { %vm96_vm14 = vcmp.eq.s32.totalorder %v2648_v17, %v2660_v21  ;;  %1105 = vxpose.xlu1.b32.cont [4/16] (narrow) %v1089_v29, 32  ;;  %2295 = vmatpush1.bf16.msk.msra.mxu0 %vm2294_vm12, %v4360_v30  ;;  %vm2310_vm15 = vmpackc.low %vm79_vm8, %vm71_vm7  ;;  %vm85_vm0 = vcmp.eq.s32.totalorder %v2645_v16, %v2675_v26  ;;  %vm93_vm1 = vcmp.eq.s32.totalorder %v2648_v17, %v2675_v26  ;;  %v55_v36 = vsub.s32 4, %v2615_v5  ;;  %v1095_v57 = vld [vmem:[%s4356_s3 + $0x48] sm:$0xff]  ;;  %v1096_v1 = vld [vmem:[%s4356_s3 + $0x50] sm:$0xff] }
  0x11   :  { %vm87_vm2 = vcmp.eq.s32.totalorder %v2645_v16, %v2678_v27  ;;  %2311 = vmatpush1.bf16.msk.msra.mxu1 %vm2310_vm15, %v4360_v30  ;;  %vm2296_vm3 = vmpackc.low %vm94_vm11, %vm86_vm10  ;;  %vm95_vm4 = vcmp.eq.s32.totalorder %v2648_v17, %v2678_v27  ;;  %vm102_vm5 = vcmp.eq.s32.totalorder %v2651_v18, %v2657_v20  ;;  %vm110_vm6 = vcmp.eq.s32.totalorder %v2654_v19, %v2657_v20  ;;  %v1097_v12 = vld [vmem:[%s4356_s3 + $0x58] sm:$0xff] }
  0x12   :  { %vm104_vm7 = vcmp.eq.s32.totalorder %v2651_v18, %v2660_v21  ;;  %689 = vxpose.xlu0.b32.cont [5/8] (short) (narrow) %v681_v33, 32  ;;  %2297 = vmatprep.subr.msk.bf16.mxu0 %vm2296_vm3, %v4360_v30  ;;  %vm2312_vm8 = vmpackc.low %vm96_vm14, %vm88_vm13  ;;  %vm112_vm9 = vcmp.eq.s32.totalorder %v2654_v19, %v2660_v21  ;;  %vm101_vm10 = vcmp.eq.s32.totalorder %v2651_v18, %v2675_v26  ;;  %v63_v38 = vsub.s32 6, %v2615_v5 }
  0x13   :  { %vm109_vm11 = vcmp.eq.s32.totalorder %v2654_v19, %v2675_v26  ;;  %2313 = vmatprep.subr.msk.bf16.mxu1 %vm2312_vm8, %v4360_v30  ;;  %vm2298_vm12 = vmpackc.low %vm93_vm1, %vm85_vm0  ;;  %vm103_vm13 = vcmp.eq.s32.totalorder %v2651_v18, %v2678_v27  ;;  %vm111_vm14 = vcmp.eq.s32.totalorder %v2654_v19, %v2678_v27  ;;  %vm126_vm3 = vcmp.eq.s32.totalorder %v2666_v23, %v2657_v20 }
  0x14   :  { %1106 = vxpose.xlu1.b32.cont [5/16] (narrow) %v1090_v37, 32  ;;  %2299 = vmatpush1.bf16.msk.msra.mxu0 %vm2298_vm12, %v4360_v30  ;;  %vm2314_vm0 = vmpackc.low %vm95_vm4, %vm87_vm2  ;;  %vm120_vm1 = vcmp.eq.s32.totalorder %v2663_v22, %v2660_v21  ;;  %vm128_vm8 = vcmp.eq.s32.totalorder %v2666_v23, %v2660_v21  ;;  %vm117_vm15 = vcmp.eq.s32.totalorder %v2663_v22, %v2675_v26  ;;  %v4404_v58 = vmov 0 }
  0x15   :  { %2315 = vmatpush1.bf16.msk.msra.mxu1 %vm2314_vm0, %v4360_v30  ;;  %vm2300_vm2 = vmpackc.low %vm110_vm6, %vm102_vm5  ;;  %vm125_vm4 = vcmp.eq.s32.totalorder %v2666_v23, %v2675_v26  ;;  %vm119_vm12 = vcmp.eq.s32.totalorder %v2663_v22, %v2678_v27  ;;  %v2820_v41 = vrot.slane %v2637_v14, %v59_v28  ;;  %v2825_v42 = vrot.slane %v2637_v14, %v67_v32 }
  0x16   :  { %690 = vxpose.xlu0.b32.cont [6/8] (short) (narrow) %v682_v39, 32  ;;  %2301 = vmatprep.subr.msk.bf16.mxu0 %vm2300_vm2, %v4360_v30  ;;  %vm2316_vm5 = vmpackc.low %vm112_vm9, %vm104_vm7  ;;  %vm127_vm6 = vcmp.eq.s32.totalorder %v2666_v23, %v2678_v27  ;;  %v2839_v43 = vrot.slane %v2637_v14, %v55_v36  ;;  %v2844_v44 = vrot.slane %v2637_v14, %v63_v38  ;;  %v4408_v59 = vmov 0 }
  0x17   :  { %2317 = vmatprep.subr.msk.bf16.mxu1 %vm2316_vm5, %v4360_v30  ;;  %vm2302_vm7 = vmpackc.low %vm109_vm11, %vm101_vm10  ;;  %vm74_vm9 = vcmp.eq.s32.totalorder %v2615_v5, %v2820_v41  ;;  %v2863_v46 = vrot.slane %v2642_v15, %v59_v28  ;;  %vm76_vm2 = vcmp.eq.s32.totalorder %v2615_v5, %v2825_v42  ;;  %vm98_vm11 = vcmp.eq.s32.totalorder %v2648_v17, %v2820_v41 }
  0x18   :  { %1107 = vxpose.xlu1.b32.cont [6/16] (narrow) %v1091_v40, 32  ;;  %2303 = vmatpush1.bf16.msk.msra.mxu0 %vm2302_vm7, %v4360_v30  ;;  %vm2318_vm10 = vmpackc.low %vm111_vm14, %vm103_vm13  ;;  %vm4382_vm7 = vcmp.eq.s32.totalorder %v2663_v22, %v2657_v20  ;;  %vm84_vm14 = vcmp.eq.s32.totalorder %v2632_v13, %v2825_v42  ;;  %vm83_vm5 = vcmp.eq.s32.totalorder %v2632_v13, %v2844_v44  ;;  %v4411_v60 = vmov 0 }
  0x19   :  { %2319 = vmatpush1.bf16.msk.msra.mxu1 %vm2318_vm10, %v4360_v30  ;;  %vm2304_vm13 = vmpackc.low %vm126_vm3, %vm4382_vm7  ;;  %vm92_vm10 = vcmp.eq.s32.totalorder %v2645_v16, %v2825_v42  ;;  %vm106_vm7 = vcmp.eq.s32.totalorder %v2651_v18, %v2820_v41  ;;  %v4415_v61 = vmov 0  ;;  %v3155_v62 = vadd.s32 64, %v2615_v5 }
  0x1a   :  { %691 = vxpose.xlu0.b32.cont [7/8] (short) (narrow) %v683_v45, 32  ;;  %2305 = vmatprep.subr.msk.bf16.mxu0 %vm2304_vm13, %v4360_v30  ;;  %vm2320_vm3 = vmpackc.low %vm128_vm8, %vm120_vm1  ;;  %vm97_vm8 = vcmp.eq.s32.totalorder %v2648_v17, %v2839_v43  ;;  %vm91_vm13 = vcmp.eq.s32.totalorder %v2645_v16, %v2844_v44  ;;  %v3158_v63 = vadd.s32 72, %v2615_v5  ;;  %v3161_v0 = vadd.s32 80, %v2615_v5 }
  0x1b   :  { %2321 = vmatprep.subr.msk.bf16.mxu1 %vm2320_vm3, %v4360_v30  ;;  %vm2306_vm1 = vmpackc.low %vm125_vm4, %vm117_vm15  ;;  %vm4385_vm4 = vcmp.eq.s32.totalorder %v2632_v13, %v2839_v43  ;;  %v3169_v3 = vrot.slane %v2642_v15, %v67_v32  ;;  %v4419_v4 = vmov 0  ;;  %v3182_v6 = vadd.s32 88, %v2615_v5 }
  0x1c   :  { %1108 = vxpose.xlu1.b32.cont [7/16] (narrow) %v1092_v47, 32  ;;  %2307 = vmatpush1.bf16.msk.msra.mxu0 %vm2306_vm1, %v4360_v30  ;;  %vm2322_vm15 = vmpackc.low %vm127_vm6, %vm119_vm12  ;;  %vm4383_vm12 = vcmp.eq.s32.totalorder %v2632_v13, %v2820_v41  ;;  %vm105_vm1 = vcmp.eq.s32.totalorder %v2651_v18, %v2839_v43  ;;  %v3185_v7 = vadd.s32 96, %v2615_v5  ;;  %v3188_v8 = vadd.s32 104, %v2615_v5 }
  0x1d   :  { %2323 = vmatpush1.bf16.msk.msra.mxu1 %vm2322_vm15, %v4360_v30  ;;  %vm2324_vm6 = vmpackc.low %vm4383_vm12, %vm74_vm9  ;;  %vm4388_vm12 = vcmp.eq.s32.totalorder %v2615_v5, %v2844_v44  ;;  %vm4413_vm15 = vcmp.eq.s32.totalorder %v2651_v18, %v2844_v44  ;;  %vm4422_vm0 = vcmp.eq.s32.totalorder %v2666_v23, %v2825_v42  ;;  %v4423_v9 = vmov 0 }
  0x1e   :  { %692 = vxpose.xlu0.b32.end [8/8] (short) (narrow) %v684_v48, 32  ;;  %2325 = vmatprep.subr.msk.bf16.mxu0 %vm2324_vm6, %v4360_v30  ;;  %vm2340_vm9 = vmpackc.low %vm84_vm14, %vm76_vm2  ;;  %vm4384_vm6 = vcmp.eq.s32.totalorder %v2615_v5, %v2839_v43  ;;  %vm4397_vm2 = vcmp.eq.s32.totalorder %v2645_v16, %v2839_v43  ;;  %vm4421_vm14 = vcmp.eq.s32.totalorder %v2663_v22, %v2825_v42  ;;  %v4427_v10 = vmov 0 }
  0x1f   :  { %2341 = vmatprep.subr.msk.bf16.mxu1 %vm2340_vm9, %v4360_v30  ;;  %vm2980_vm3 = vmpackc.low %vm4385_vm4, %vm4384_vm6  ;;  %vm4406_vm9 = vcmp.eq.s32.totalorder %v2651_v18, %v2825_v42  ;;  %v4431_v11 = vmov 0  ;;  %v4435_v14 = vmov 0  ;;  %v4439_v20 = vmov 0 }
  0x20   :  { %1109 = vxpose.xlu1.b32.cont [8/16] (narrow) %v1093_v49, 32  ;;  %vm2998_vm4 = vmpackc.low %vm83_vm5, %vm4388_vm12  ;;  %vm4391_vm5 = vcmp.eq.s32.totalorder %v2645_v16, %v2820_v41  ;;  %v4443_v21 = vmov 0  ;;  %v3304_v24 = vrot.slane %v2642_v15, %v55_v36  ;;  %v3309_v26 = vrot.slane %v2642_v15, %v63_v38  ;;  %v1098_v15 = vld [vmem:[%s4356_s3 + $0x60] sm:$0xff]  ;;  %v1099_v38 = vld [vmem:[%s4356_s3 + $0x68] sm:$0xff] }
  0x21   :  { %vm3019_vm12 = vmpackc.low %vm98_vm11, %vm4391_vm5  ;;  %vm4394_vm11 = vcmp.eq.s32.totalorder %v2648_v17, %v2825_v42  ;;  %v4447_v27 = vmov 0  ;;  %v3322_v28 = vadd.s32 112, %v2615_v5  ;;  %v3325_v29 = vadd.s32 120, %v2615_v5  ;;  %v1101_v49 = vld [vmem:[%s4356_s3 + $0x78] sm:$0xff] }
  0x22   :  { %vm3037_vm5 = vmpackc.low %vm4394_vm11, %vm92_vm10  ;;  %v4451_v32 = vmov 0  ;;  %v4455_v33 = vmov 0  ;;  %v4459_v36 = vmov 0  ;;  %v4463_v37 = vmov 0 }
  0x23   :  { %vm3055_vm10 = vmpackc.low %vm97_vm8, %vm4397_vm2  ;;  %vm4400_vm8 = vcmp.eq.s32.totalorder %v2648_v17, %v2844_v44  ;;  %v4467_v39 = vmov 0  ;;  %v4471_v40 = vmov 0  ;;  %v4487_v45 = vmov 0 }
  0x24   :  { %1110 = vxpose.xlu1.b32.cont [9/16] (narrow) %v1094_v52, 32  ;;  %vm3073_vm2 = vmpackc.low %vm4400_vm8, %vm91_vm13  ;;  %vm4403_vm13 = vcmp.eq.s32.totalorder %v2654_v19, %v2820_v41  ;;  %v4491_v47 = vmov 0  ;;  %v4495_v48 = vmov 0  ;;  %v4499_v52 = vmov 0 }
  0x25   :  { %vm3094_vm8 = vmpackc.low %vm4403_vm13, %vm106_vm7  ;;  %vm4407_vm7 = vcmp.eq.s32.totalorder %v2654_v19, %v2825_v42  ;;  %v4479_v42 = vmov 0  ;;  %v4532_v2 = vmov 0  ;;  %v4537_v30 = vmov 0 }
  0x26   :  { %v4405_v58 = vsel %vm3094_vm8, 4294967295, %v4404_v58  ;;  %vm3112_vm13 = vmpackc.low %vm4407_vm7, %vm4406_vm9  ;;  %vm4410_vm9 = vcmp.eq.s32.totalorder %v2654_v19, %v2839_v43 }
  0x27   :  { %v4409_v59 = vsel %vm3112_vm13, 4294967295, %v4408_v59  ;;  %vm3130_vm7 = vmpackc.low %vm4410_vm9, %vm105_vm1  ;;  %vm4414_vm1 = vcmp.eq.s32.totalorder %v2654_v19, %v2844_v44 }
  0x28   :  { %v4412_v60 = vsel %vm3130_vm7, 4294967295, %v4411_v60  ;;  %1111 = vxpose.xlu1.b32.cont [10/16] (narrow) %v1095_v57, 32  ;;  %vm3148_vm9 = vmpackc.low %vm4414_vm1, %vm4413_vm15  ;;  %vm4417_vm15 = vcmp.eq.s32.totalorder %v2663_v22, %v2820_v41  ;;  %vm4418_vm1 = vcmp.eq.s32.totalorder %v2666_v23, %v2820_v41  ;;  %vm4425_vm7 = vcmp.eq.s32.totalorder %v2663_v22, %v2839_v43 }
  0x29   :  { %v4416_v61 = vsel %vm3148_vm9, 4294967295, %v4415_v61  ;;  %vm3177_vm11 = vmpackc.low %vm4418_vm1, %vm4417_vm15  ;;  %vm4450_vm15 = vcmp.eq.s32.totalorder %v2648_v17, %v2672_v25  ;;  %v4475_v41 = vmov 0  ;;  %vm4478_vm9 = vcmp.eq.s32.totalorder %v2654_v19, %v2720_v35 }
  0x2a   :  { %v4420_v4 = vsel %vm3177_vm11, 4294967295, %v4419_v4  ;;  %vm3196_vm6 = vmpackc.low %vm4422_vm0, %vm4421_vm14  ;;  %vm4426_vm0 = vcmp.eq.s32.totalorder %v2666_v23, %v2839_v43  ;;  %v1100_v43 = vld [vmem:[%s4356_s3 + $0x70] sm:$0xff]  ;;  %v4503_v57 = vmov 0  ;;  %s2579_s3 = smov [#allocation2]  }
  0x2b   :  { %v4424_v9 = vsel %vm3196_vm6, 4294967295, %v4423_v9  ;;  %vm3214_vm14 = vmpackc.low %vm4426_vm0, %vm4425_vm7  ;;  %vm4429_vm6 = vcmp.eq.s32.totalorder %v2663_v22, %v2844_v44  ;;  %vm4430_vm7 = vcmp.eq.s32.totalorder %v2666_v23, %v2844_v44  ;;  %v4483_v44 = vmov 0  ;;  %s1872_s10 = sshll.u32 %s2579_s3, 4  ;;  %s1873_s10 = int_to_ptr.vmem [resolvable:$true] %s1872_s10 }
  0x2c   :  { %v4428_v10 = vsel %vm3214_vm14, 4294967295, %v4427_v10  ;;  %1112 = vxpose.xlu1.b32.cont [11/16] (narrow) %v1096_v1, 32  ;;  %vm3232_vm0 = vmpackc.low %vm4430_vm7, %vm4429_vm6  ;;  %vm4433_vm6 = vcmp.eq.s32.totalorder %v2615_v5, %v2672_v25  ;;  %vm4434_vm7 = vcmp.eq.s32.totalorder %v2632_v13, %v2672_v25  ;;  %vm4437_vm14 = vcmp.eq.s32.totalorder %v2615_v5, %v2702_v31  ;;  %s2552_s11 = scalar_lea.vmem %s1873_s10, 128  ;;  %p2557_p1 = scmp.lt.s32.totalorder %s1873_s10, %s1873_s10 }
  0x2d   :  { %v4432_v11 = vsel %vm3232_vm0, 4294967295, %v4431_v11  ;;  %vm3253_vm1 = vmpackc.low %vm4434_vm7, %vm4433_vm6  ;;  %vm4438_vm6 = vcmp.eq.s32.totalorder %v2632_v13, %v2702_v31  ;;  %vm4449_vm0 = vcmp.eq.s32.totalorder %v2645_v16, %v2672_v25  ;;  %v4507_v1 = vmov 0  ;;  %p2553_p0 = scmp.ne.s32.totalorder %s1873_s10, %s2552_s11  ;;  %p2558_p2 = scmp.lt.s32.totalorder %s2552_s11, %s2552_s11 }
  0x2e   :  { %v4436_v14 = vsel %vm3253_vm1, 4294967295, %v4435_v14  ;;  %vm3271_vm7 = vmpackc.low %vm4438_vm6, %vm4437_vm14  ;;  %vm4441_vm1 = vcmp.eq.s32.totalorder %v2615_v5, %v2714_v34  ;;  %vm4442_vm14 = vcmp.eq.s32.totalorder %v2632_v13, %v2714_v34 }
  0x2f   :  { %v4440_v20 = vsel %vm3271_vm7, 4294967295, %v4439_v20  ;;  %vm3289_vm6 = vmpackc.low %vm4442_vm14, %vm4441_vm1  ;;  %vm4445_vm1 = vcmp.eq.s32.totalorder %v2615_v5, %v2720_v35  ;;  %vm4446_vm14 = vcmp.eq.s32.totalorder %v2632_v13, %v2720_v35  ;;  %vm4453_vm7 = vcmp.eq.s32.totalorder %v2645_v16, %v2702_v31  ;;  %p2559_p3 = por %p2558_p2, %p2557_p1 }
  0x30   :  { %v4444_v21 = vsel %vm3289_vm6, 4294967295, %v4443_v21  ;;  %1113 = vxpose.xlu1.b32.cont [12/16] (narrow) %v1097_v12, 32  ;;  %vm3317_vm11 = vmpackc.low %vm4446_vm14, %vm4445_vm1  ;;  %vm4465_vm6 = vcmp.eq.s32.totalorder %v2651_v18, %v2672_v25  ;;  %vm4466_vm14 = vcmp.eq.s32.totalorder %v2654_v19, %v2672_v25  ;;  %v4511_v12 = vmov 0 }
  0x31   :  { %v4448_v27 = vsel %vm3317_vm11, 4294967295, %v4447_v27  ;;  %vm3336_vm1 = vmpackc.low %vm4450_vm15, %vm4449_vm0  ;;  %vm4454_vm15 = vcmp.eq.s32.totalorder %v2648_v17, %v2702_v31  ;;  %vm4477_vm11 = vcmp.eq.s32.totalorder %v2651_v18, %v2720_v35  ;;  %p2560_p4 = pnand %p2559_p3, %p2553_p0 }
  0x32   :  { %v4452_v32 = vsel %vm3336_vm1, 4294967295, %v4451_v32  ;;  %vm3354_vm0 = vmpackc.low %vm4454_vm15, %vm4453_vm7  ;;  %vm4457_vm1 = vcmp.eq.s32.totalorder %v2645_v16, %v2714_v34  ;;  %vm4458_vm7 = vcmp.eq.s32.totalorder %v2648_v17, %v2714_v34 }
  0x33   :  { %v4456_v33 = vsel %vm3354_vm0, 4294967295, %v4455_v33  ;;  %vm3372_vm15 = vmpackc.low %vm4458_vm7, %vm4457_vm1  ;;  %vm4461_vm0 = vcmp.eq.s32.totalorder %v2645_v16, %v2720_v35  ;;  %vm4462_vm1 = vcmp.eq.s32.totalorder %v2648_v17, %v2720_v35 }
  0x34   :  { %v4460_v36 = vsel %vm3372_vm15, 4294967295, %v4459_v36  ;;  %1114 = vxpose.xlu1.b32.cont [13/16] (narrow) %v1098_v15, 32  ;;  %vm3390_vm7 = vmpackc.low %vm4462_vm1, %vm4461_vm0  ;;  %vm4469_vm15 = vcmp.eq.s32.totalorder %v2651_v18, %v2702_v31  ;;  %v4515_v15 = vmov 0 }
  0x35   :  { %v4464_v37 = vsel %vm3390_vm7, 4294967295, %v4463_v37  ;;  %vm3407_vm0 = vmpackc.low %vm4466_vm14, %vm4465_vm6  ;;  %vm4470_vm6 = vcmp.eq.s32.totalorder %v2654_v19, %v2702_v31 }
  0x36   :  { %v4468_v39 = vsel %vm3407_vm0, 4294967295, %v4467_v39  ;;  %vm3425_vm14 = vmpackc.low %vm4470_vm6, %vm4469_vm15  ;;  %vm4473_vm0 = vcmp.eq.s32.totalorder %v2651_v18, %v2714_v34  ;;  %vm4474_vm15 = vcmp.eq.s32.totalorder %v2654_v19, %v2714_v34 }
  0x37   :  { %v4472_v40 = vsel %vm3425_vm14, 4294967295, %v4471_v40  ;;  %vm3443_vm6 = vmpackc.low %vm4474_vm15, %vm4473_vm0  ;;  %vm4481_vm0 = vcmp.eq.s32.totalorder %v2663_v22, %v2672_v25  ;;  %vm4482_vm15 = vcmp.eq.s32.totalorder %v2666_v23, %v2672_v25  ;;  %vm4485_vm14 = vcmp.eq.s32.totalorder %v2663_v22, %v2702_v31 }
  0x38   :  { %v4476_v41 = vsel %vm3443_vm6, 4294967295, %v4475_v41  ;;  %1115 = vxpose.xlu1.b32.cont [14/16] (narrow) %v1099_v38, 32  ;;  %vm3453_vm1 = vmpackc.low %vm4478_vm9, %vm4477_vm11  ;;  %vm4493_vm9 = vcmp.eq.s32.totalorder %v2663_v22, %v2720_v35  ;;  %v4519_v38 = vmov 0 }
  0x39   :  { %v4480_v42 = vsel %vm3453_vm1, 4294967295, %v4479_v42  ;;  %vm3466_vm7 = vmpackc.low %vm4482_vm15, %vm4481_vm0  ;;  %vm4486_vm0 = vcmp.eq.s32.totalorder %v2666_v23, %v2702_v31  ;;  %vm4494_vm1 = vcmp.eq.s32.totalorder %v2666_v23, %v2720_v35 }
  0x3a   :  { %v4484_v44 = vsel %vm3466_vm7, 4294967295, %v4483_v44  ;;  %vm3484_vm15 = vmpackc.low %vm4486_vm0, %vm4485_vm14  ;;  %vm4489_vm7 = vcmp.eq.s32.totalorder %v2663_v22, %v2714_v34  ;;  %vm4490_vm14 = vcmp.eq.s32.totalorder %v2666_v23, %v2714_v34 }
  0x3b   :  { %v4488_v45 = vsel %vm3484_vm15, 4294967295, %v4487_v45  ;;  %vm3502_vm0 = vmpackc.low %vm4490_vm14, %vm4489_vm7  ;;  %vm4497_vm7 = vcmp.eq.s32.totalorder %v3155_v62, %v2672_v25  ;;  %vm4498_vm14 = vcmp.eq.s32.totalorder %v3158_v63, %v2672_v25  ;;  %vm4501_vm15 = vcmp.eq.s32.totalorder %v3155_v62, %v2702_v31 }
  0x3c   :  { %v4492_v47 = vsel %vm3502_vm0, 4294967295, %v4491_v47  ;;  %1116 = vxpose.xlu1.b32.cont [15/16] (narrow) %v1100_v43, 32  ;;  %vm3512_vm11 = vmpackc.low %vm4494_vm1, %vm4493_vm9  ;;  %vm4509_vm9 = vcmp.eq.s32.totalorder %v3155_v62, %v2720_v35  ;;  %vm4517_vm0 = vcmp.eq.s32.totalorder %v3161_v0, %v2702_v31  ;;  %v4523_v43 = vmov 0 }
  0x3d   :  { %v4496_v48 = vsel %vm3512_vm11, 4294967295, %v4495_v48  ;;  %vm3525_vm6 = vmpackc.low %vm4498_vm14, %vm4497_vm7  ;;  %vm4502_vm7 = vcmp.eq.s32.totalorder %v3158_v63, %v2702_v31  ;;  %vm4510_vm11 = vcmp.eq.s32.totalorder %v3158_v63, %v2720_v35 }
  0x3e   :  { %v4500_v52 = vsel %vm3525_vm6, 4294967295, %v4499_v52  ;;  %vm3543_vm14 = vmpackc.low %vm4502_vm7, %vm4501_vm15  ;;  %vm4505_vm6 = vcmp.eq.s32.totalorder %v3155_v62, %v2714_v34  ;;  %vm4506_vm15 = vcmp.eq.s32.totalorder %v3158_v63, %v2714_v34 }
  0x3f   :  { %v4504_v57 = vsel %vm3543_vm14, 4294967295, %v4503_v57  ;;  %vm3561_vm7 = vmpackc.low %vm4506_vm15, %vm4505_vm6  ;;  %vm4513_vm15 = vcmp.eq.s32.totalorder %v3161_v0, %v2672_v25  ;;  %vm4518_vm6 = vcmp.eq.s32.totalorder %v3182_v6, %v2702_v31 }
  0x40   :  { %v4508_v1 = vsel %vm3561_vm7, 4294967295, %v4507_v1  ;;  %1117 = vxpose.xlu1.b32.end [16/16] (narrow) %v1101_v49, 32  ;;  %vm3571_vm1 = vmpackc.low %vm4510_vm11, %vm4509_vm9  ;;  %vm4514_vm7 = vcmp.eq.s32.totalorder %v3182_v6, %v2672_v25  ;;  %vm4525_vm9 = vcmp.eq.s32.totalorder %v3161_v0, %v2720_v35  ;;  %v4527_v49 = vmov 0 }
  0x41   :  { %v4512_v12 = vsel %vm3571_vm1, 4294967295, %v4511_v12  ;;  %vm3585_vm14 = vmpackc.low %vm4514_vm7, %vm4513_vm15  ;;  %vm4521_vm7 = vcmp.eq.s32.totalorder %v3161_v0, %v2714_v34  ;;  %vm4522_vm15 = vcmp.eq.s32.totalorder %v3182_v6, %v2714_v34 }
  0x42   :  { %v4516_v15 = vsel %vm3585_vm14, 4294967295, %v4515_v15  ;;  %vm3599_vm1 = vmpackc.low %vm4518_vm6, %vm4517_vm0  ;;  %vm4526_vm14 = vcmp.eq.s32.totalorder %v3182_v6, %v2720_v35  ;;  %vm4535_vm6 = vcmp.eq.s32.totalorder %v3185_v7, %v2702_v31 }
  0x43   :  { %v4520_v38 = vsel %vm3599_vm1, 4294967295, %v4519_v38  ;;  %vm3609_vm11 = vmpackc.low %vm4522_vm15, %vm4521_vm7  ;;  %vm4530_vm7 = vcmp.eq.s32.totalorder %v3185_v7, %v2672_v25  ;;  %vm4531_vm15 = vcmp.eq.s32.totalorder %v3188_v8, %v2672_v25  ;;  %vm4536_vm1 = vcmp.eq.s32.totalorder %v3188_v8, %v2702_v31 }
  0x44   :  { %v4524_v43 = vsel %vm3609_vm11, 4294967295, %v4523_v43  ;;  %vm3619_vm0 = vmpackc.low %vm4526_vm14, %vm4525_vm9  ;;  %vm4544_vm9 = vcmp.eq.s32.totalorder %v3185_v7, %v2720_v35 }
  0x45   :  { %v4528_v49 = vsel %vm3619_vm0, 4294967295, %v4527_v49  ;;  %vm3633_vm11 = vmpackc.low %vm4531_vm15, %vm4530_vm7  ;;  %vm4539_vm7 = vcmp.eq.s32.totalorder %v3185_v7, %v2714_v34  ;;  %vm4540_vm15 = vcmp.eq.s32.totalorder %v3188_v8, %v2714_v34 }
  0x46   :  { %4529 = vst [vmem:[#allocation5_spill] sm:$0xff] %v4528_v49  ;;  %v4533_v2 = vsel %vm3633_vm11, 4294967295, %v4532_v2  ;;  %vm3647_vm0 = vmpackc.low %vm4536_vm1, %vm4535_vm6  ;;  %vm4545_vm11 = vcmp.eq.s32.totalorder %v3188_v8, %v2720_v35  ;;  %v4546_v49 = vmov 0  ;;  %vm4553_vm6 = vcmp.eq.s32.totalorder %v3322_v28, %v2702_v31 }
  0x47   :  { %4534 = vst [vmem:[#allocation6_spill] sm:$0xff] %v4533_v2  ;;  %v4538_v30 = vsel %vm3647_vm0, 4294967295, %v4537_v30  ;;  %vm3657_vm14 = vmpackc.low %vm4540_vm15, %vm4539_vm7  ;;  %v4541_v2 = vmov 0  ;;  %vm4549_vm7 = vcmp.eq.s32.totalorder %v3322_v28, %v2672_v25  ;;  %vm4550_vm15 = vcmp.eq.s32.totalorder %v3325_v29, %v2672_v25 }
  0x48   :  { %v4542_v2 = vsel %vm3657_vm14, 4294967295, %v4541_v2  ;;  %vm3667_vm1 = vmpackc.low %vm4545_vm11, %vm4544_vm9  ;;  %vm4554_vm0 = vcmp.eq.s32.totalorder %v3325_v29, %v2702_v31  ;;  %v4559_v25 = vmov 0  ;;  %vm4561_vm9 = vcmp.eq.s32.totalorder %v3322_v28, %v2720_v35 }
  0x49   :  { %4543 = vst [vmem:[#allocation7_spill] sm:$0xff] %v4542_v2  ;;  %v4547_v49 = vsel %vm3667_vm1, 4294967295, %v4546_v49  ;;  %vm3681_vm14 = vmpackc.low %vm4550_vm15, %vm4549_vm7  ;;  %v4551_v2 = vmov 0  ;;  %vm4557_vm7 = vcmp.eq.s32.totalorder %v3322_v28, %v2714_v34  ;;  %vm4558_vm15 = vcmp.eq.s32.totalorder %v3325_v29, %v2714_v34 }
  0x4a   :  { %4548 = vst [vmem:[#allocation8_spill] sm:$0xff] %v4547_v49  ;;  %v4552_v2 = vsel %vm3681_vm14, 4294967295, %v4551_v2  ;;  %vm3695_vm1 = vmpackc.low %vm4554_vm0, %vm4553_vm6  ;;  %v4555_v49 = vmov 0  ;;  %vm4562_vm14 = vcmp.eq.s32.totalorder %v3325_v29, %v2720_v35  ;;  %v4563_v31 = vmov 0 }
  0x4b   :  { %v4556_v49 = vsel %vm3695_vm1, 4294967295, %v4555_v49  ;;  %vm3705_vm11 = vmpackc.low %vm4558_vm15, %vm4557_vm7  ;;  %vm297_vm6 = vcmp.eq.s32.totalorder %v2615_v5, %v3304_v24  ;;  %vm4566_vm15 = vcmp.eq.s32.totalorder %v2615_v5, %v2863_v46  ;;  %v4568_v34 = vmov 0 }
  0x4c   :  { %v4560_v25 = vsel %vm3705_vm11, 4294967295, %v4559_v25  ;;  %vm3715_vm0 = vmpackc.low %vm4562_vm14, %vm4561_vm9  ;;  %vm4567_vm11 = vcmp.eq.s32.totalorder %v2632_v13, %v2863_v46  ;;  %vm299_vm14 = vcmp.eq.s32.totalorder %v2615_v5, %v3309_v26  ;;  %vm4571_vm7 = vcmp.eq.s32.totalorder %v2615_v5, %v3169_v3 }
  0x4d   :  { %v4564_v31 = vsel %vm3715_vm0, 4294967295, %v4563_v31  ;;  %vm3731_vm13 = vmpackc.low %vm4567_vm11, %vm4566_vm15  ;;  %vm4572_vm0 = vcmp.eq.s32.totalorder %v2632_v13, %v3169_v3  ;;  %v4573_v35 = vmov 0  ;;  %vm4575_vm11 = vcmp.eq.s32.totalorder %v2632_v13, %v3304_v24  ;;  %v4708_v53 = vld [vmem:[#allocation5_spill] sm:$0xff] }
  0x4e   :  { %4565 = vst [vmem:[#allocation9_spill] sm:$0xff] %v4564_v31  ;;  %v4569_v34 = vsel %vm3731_vm13, 4294967295, %v4568_v34  ;;  %vm3747_vm8 = vmpackc.low %vm4572_vm0, %vm4571_vm7  ;;  %vm4578_vm1 = vcmp.eq.s32.totalorder %v2632_v13, %v3309_v26  ;;  %v4579_v31 = vmov 0  ;;  %vm4582_vm0 = vcmp.eq.s32.totalorder %v2645_v16, %v2863_v46  ;;  %v4710_v54 = vld [vmem:[#allocation6_spill] sm:$0xff] }
  0x4f   :  { %4570 = vst [vmem:[#allocation10_spill] sm:$0xff] %v4569_v34  ;;  %v4574_v35 = vsel %vm3747_vm8, 4294967295, %v4573_v35  ;;  %vm3754_vm15 = vmpackc.low %vm4575_vm11, %vm297_vm6  ;;  %vm4583_vm7 = vcmp.eq.s32.totalorder %v2648_v17, %v2863_v46  ;;  %v4584_v5 = vmov 0  ;;  %vm4587_vm6 = vcmp.eq.s32.totalorder %v2645_v16, %v3169_v3 }
  0x50   :  { %vm3761_vm9 = vmpackc.low %vm4578_vm1, %vm299_vm14  ;;  %vm4588_vm11 = vcmp.eq.s32.totalorder %v2648_v17, %v3169_v3  ;;  %v4589_v13 = vmov 0  ;;  %vm4592_vm14 = vcmp.eq.s32.totalorder %v2645_v16, %v3304_v24  ;;  %v4713_v56 = vld [vmem:[#allocation7_spill] sm:$0xff] }
  0x51   :  { %v4580_v31 = vsel %vm3761_vm9, 4294967295, %v4579_v31  ;;  %vm3771_vm8 = vmpackc.low %vm4583_vm7, %vm4582_vm0  ;;  %vm4593_vm9 = vcmp.eq.s32.totalorder %v2648_v17, %v3304_v24  ;;  %vm4596_vm7 = vcmp.eq.s32.totalorder %v2645_v16, %v3309_v26  ;;  %v4607_v16 = vmov 0 }
  0x52   :  { %4581 = vst [vmem:[#allocation11_spill] sm:$0xff] %v4580_v31  ;;  %v4585_v5 = vsel %vm3771_vm8, 4294967295, %v4584_v5  ;;  %vm3781_vm1 = vmpackc.low %vm4588_vm11, %vm4587_vm6  ;;  %v4594_v31 = vmov 0  ;;  %vm4597_vm8 = vcmp.eq.s32.totalorder %v2648_v17, %v3309_v26  ;;  %vm4600_vm11 = vcmp.eq.s32.totalorder %v2651_v18, %v2863_v46 }
  0x53   :  { %4586 = vst [vmem:[#allocation12_spill] sm:$0xff] %v4585_v5  ;;  %v4590_v13 = vsel %vm3781_vm1, 4294967295, %v4589_v13  ;;  %vm3791_vm0 = vmpackc.low %vm4593_vm9, %vm4592_vm14  ;;  %v4598_v5 = vmov 0  ;;  %vm4601_vm1 = vcmp.eq.s32.totalorder %v2654_v19, %v2863_v46  ;;  %vm4605_vm14 = vcmp.eq.s32.totalorder %v2651_v18, %v3169_v3 }
  0x54   :  { %4591 = vst [vmem:[#allocation13_spill] sm:$0xff] %v4590_v13  ;;  %v4595_v31 = vsel %vm3791_vm0, 4294967295, %v4594_v31  ;;  %vm3801_vm6 = vmpackc.low %vm4597_vm8, %vm4596_vm7  ;;  %v4602_v13 = vmov 0  ;;  %vm4606_vm0 = vcmp.eq.s32.totalorder %v2654_v19, %v3169_v3  ;;  %vm4610_vm7 = vcmp.eq.s32.totalorder %v2651_v18, %v3304_v24 }
  0x55   :  { %v4599_v5 = vsel %vm3801_vm6, 4294967295, %v4598_v5  ;;  %vm3811_vm9 = vmpackc.low %vm4601_vm1, %vm4600_vm11  ;;  %vm4611_vm6 = vcmp.eq.s32.totalorder %v2654_v19, %v3304_v24  ;;  %v4612_v17 = vmov 0  ;;  %vm4614_vm11 = vcmp.eq.s32.totalorder %v2651_v18, %v3309_v26 }
  0x56   :  { %v4603_v13 = vsel %vm3811_vm9, 4294967295, %v4602_v13  ;;  %vm3821_vm8 = vmpackc.low %vm4606_vm0, %vm4605_vm14  ;;  %vm4615_vm9 = vcmp.eq.s32.totalorder %v2654_v19, %v3309_v26  ;;  %vm4618_vm14 = vcmp.eq.s32.totalorder %v2663_v22, %v2863_v46  ;;  %v4625_v18 = vmov 0 }
  0x57   :  { %4604 = vst [vmem:[#allocation14_spill] sm:$0xff] %v4603_v13  ;;  %v4608_v16 = vsel %vm3821_vm8, 4294967295, %v4607_v16  ;;  %vm3831_vm1 = vmpackc.low %vm4611_vm6, %vm4610_vm7  ;;  %v4616_v13 = vmov 0  ;;  %vm4619_vm8 = vcmp.eq.s32.totalorder %v2666_v23, %v2863_v46  ;;  %vm4623_vm7 = vcmp.eq.s32.totalorder %v2663_v22, %v3169_v3 }
  0x58   :  { %4609 = vst [vmem:[#allocation15_spill] sm:$0xff] %v4608_v16  ;;  %v4613_v17 = vsel %vm3831_vm1, 4294967295, %v4612_v17  ;;  %vm3841_vm0 = vmpackc.low %vm4615_vm9, %vm4614_vm11  ;;  %v4620_v16 = vmov 0  ;;  %vm4624_vm1 = vcmp.eq.s32.totalorder %v2666_v23, %v3169_v3  ;;  %vm4628_vm11 = vcmp.eq.s32.totalorder %v2663_v22, %v3304_v24 }
  0x59   :  { %v4617_v13 = vsel %vm3841_vm0, 4294967295, %v4616_v13  ;;  %vm3851_vm6 = vmpackc.low %vm4619_vm8, %vm4618_vm14  ;;  %vm4629_vm0 = vcmp.eq.s32.totalorder %v2666_v23, %v3304_v24  ;;  %v4630_v19 = vmov 0  ;;  %vm4632_vm14 = vcmp.eq.s32.totalorder %v2663_v22, %v3309_v26 }
  0x5a   :  { %v4621_v16 = vsel %vm3851_vm6, 4294967295, %v4620_v16  ;;  %vm3861_vm9 = vmpackc.low %vm4624_vm1, %vm4623_vm7  ;;  %vm4633_vm6 = vcmp.eq.s32.totalorder %v2666_v23, %v3309_v26  ;;  %vm4636_vm7 = vcmp.eq.s32.totalorder %v3155_v62, %v2863_v46  ;;  %v4643_v22 = vmov 0 }
  0x5b   :  { %4622 = vst [vmem:[#allocation16_spill] sm:$0xff] %v4621_v16  ;;  %v4626_v18 = vsel %vm3861_vm9, 4294967295, %v4625_v18  ;;  %vm3871_vm8 = vmpackc.low %vm4629_vm0, %vm4628_vm11  ;;  %v4634_v16 = vmov 0  ;;  %vm4637_vm9 = vcmp.eq.s32.totalorder %v3158_v63, %v2863_v46  ;;  %vm4641_vm11 = vcmp.eq.s32.totalorder %v3155_v62, %v3169_v3 }
  0x5c   :  { %4627 = vst [vmem:[#allocation17_spill] sm:$0xff] %v4626_v18  ;;  %v4631_v19 = vsel %vm3871_vm8, 4294967295, %v4630_v19  ;;  %vm3881_vm1 = vmpackc.low %vm4633_vm6, %vm4632_vm14  ;;  %v4638_v18 = vmov 0  ;;  %vm4642_vm8 = vcmp.eq.s32.totalorder %v3158_v63, %v3169_v3  ;;  %vm4646_vm14 = vcmp.eq.s32.totalorder %v3161_v0, %v2863_v46 }
  0x5d   :  { %v4635_v16 = vsel %vm3881_vm1, 4294967295, %v4634_v16  ;;  %vm3891_vm0 = vmpackc.low %vm4637_vm9, %vm4636_vm7  ;;  %vm4647_vm1 = vcmp.eq.s32.totalorder %v3182_v6, %v2863_v46  ;;  %v4648_v23 = vmov 0  ;;  %vm4651_vm7 = vcmp.eq.s32.totalorder %v3161_v0, %v3169_v3 }
  0x5e   :  { %v4639_v18 = vsel %vm3891_vm0, 4294967295, %v4638_v18  ;;  %vm3901_vm6 = vmpackc.low %vm4642_vm8, %vm4641_vm11  ;;  %vm4652_vm0 = vcmp.eq.s32.totalorder %v3182_v6, %v3169_v3  ;;  %vm4656_vm11 = vcmp.eq.s32.totalorder %v3185_v7, %v2863_v46 }
  0x5f   :  { %4640 = vst [vmem:[#allocation18_spill] sm:$0xff] %v4639_v18  ;;  %v4644_v22 = vsel %vm3901_vm6, 4294967295, %v4643_v22  ;;  %vm3911_vm9 = vmpackc.low %vm4647_vm1, %vm4646_vm14  ;;  %v4653_v18 = vmov 0  ;;  %vm4657_vm6 = vcmp.eq.s32.totalorder %v3188_v8, %v2863_v46  ;;  %vm4661_vm14 = vcmp.eq.s32.totalorder %v3185_v7, %v3169_v3 }
  0x60   :  { %4645 = vst [vmem:[#allocation19_spill] sm:$0xff] %v4644_v22  ;;  %v4649_v23 = vsel %vm3911_vm9, 4294967295, %v4648_v23  ;;  %vm3921_vm8 = vmpackc.low %vm4652_vm0, %vm4651_vm7  ;;  %v4658_v22 = vmov 0  ;;  %vm4662_vm9 = vcmp.eq.s32.totalorder %v3188_v8, %v3169_v3  ;;  %vm4666_vm7 = vcmp.eq.s32.totalorder %v3322_v28, %v2863_v46 }
  0x61   :  { %4650 = vst [vmem:[#allocation20_spill] sm:$0xff] %v4649_v23  ;;  %v4654_v18 = vsel %vm3921_vm8, 4294967295, %v4653_v18  ;;  %vm3931_vm1 = vmpackc.low %vm4657_vm6, %vm4656_vm11  ;;  %v4663_v23 = vmov 0  ;;  %vm4667_vm8 = vcmp.eq.s32.totalorder %v3325_v29, %v2863_v46  ;;  %vm4671_vm11 = vcmp.eq.s32.totalorder %v3322_v28, %v3169_v3 }
  0x62   :  { %4655 = vst [vmem:[#allocation21_spill] sm:$0xff] %v4654_v18  ;;  %v4659_v22 = vsel %vm3931_vm1, 4294967295, %v4658_v22  ;;  %vm3941_vm0 = vmpackc.low %vm4662_vm9, %vm4661_vm14  ;;  %v4668_v18 = vmov 0  ;;  %vm4672_vm1 = vcmp.eq.s32.totalorder %v3325_v29, %v3169_v3  ;;  %vm717_vm14 = vcmask 523264  }
  0x63   :  { %4660 = vst [vmem:[#allocation22_spill] sm:$0xff] %v4659_v22  ;;  %v4664_v23 = vsel %vm3941_vm0, 4294967295, %v4663_v23  ;;  %vm3951_vm6 = vmpackc.low %vm4667_vm8, %vm4666_vm7  ;;  %v4675_v46 = vmov 1.0|1.0   ;;  %vm4683_vm8 = vnez %v4428_v10  ;;  %vm4685_vm7 = vnez %v4436_v14  ;;  %v4732_v10 = vld [vmem:[#allocation14_spill] sm:$0xff] }
  0x64   :  { %4665 = vst [vmem:[#allocation23_spill] sm:$0xff] %v4664_v23  ;;  %v4669_v18 = vsel %vm3951_vm6, 4294967295, %v4668_v18  ;;  %vm3961_vm9 = vmpackc.low %vm4672_vm1, %vm4671_vm11  ;;  %vm4684_vm1 = vnez %v4432_v11  ;;  %vm4686_vm11 = vnez %v4440_v20  ;;  %v4734_v11 = vld [vmem:[#allocation15_spill] sm:$0xff]  ;;  %v4738_v20 = vld [vmem:[#allocation16_spill] sm:$0xff] }
  0x65   :  { %4670 = vst [vmem:[#allocation24_spill] sm:$0xff] %v4669_v18  ;;  %v4676_v18 = vmov 0.0  }
  0x82   :  { %v701_v23 = vpop.trf.xlu0 }
  0x83   :  { %2088 = vmatmul.mubr.msk.f32.vlgmr.msra.gmra.mrb[0].mxu0 %vm717_vm14, %v701_v23  ;;  %2108 = vmatmul.mubr.msk.f32.vlgmr.msra.gmra.mrb[0].mxu1 %vm717_vm14, %v701_v23 }
  0x84   :  { %2327 = vmatpush1.bf16.msk.msra.mxu0 %vm2980_vm3, %v4675_v46  ;;  %2343 = vmatpush1.bf16.msk.msra.mxu1 %vm2998_vm4, %v4675_v46  ;;  %vm4677_vm3 = vnez %v4405_v58  ;;  %vm4678_vm4 = vnez %v4409_v59  ;;  %v4117_v55 = vpop.trf.xlu1  ;;  %v4715_v58 = vld [vmem:[#allocation8_spill] sm:$0xff] }
  0x85   :  { %800 = vmatprep.mubr.f32.mxu0 %v4676_v18  ;;  %889 = vmatprep.mubr.f32.mxu1 %v4676_v18 }
  0x86   :  { %v702_v3 = vpop.trf.xlu0  ;;  %2329 = vmatprep.subr.msk.bf16.mxu0 %vm3019_vm12, %v4675_v46  ;;  %2345 = vmatprep.subr.msk.bf16.mxu1 %vm3037_vm5, %v4675_v46  ;;  %vm4679_vm12 = vnez %v4412_v60  ;;  %vm4680_vm5 = vnez %v4416_v61  ;;  %v4726_v61 = vld [vmem:[#allocation12_spill] sm:$0xff] }
  0x87   :  { %2089 = vmatmul.mubr.msk.f32.gmra.mrb[2].mxu0 %vm717_vm14, %v702_v3  ;;  %2109 = vmatmul.mubr.msk.f32.gmra.mrb[2].mxu1 %vm717_vm14, %v702_v3 }
  0x88   :  { %2331 = vmatpush1.bf16.msk.msra.mxu0 %vm3055_vm10, %v4675_v46  ;;  %2347 = vmatpush1.bf16.msk.msra.mxu1 %vm3073_vm2, %v4675_v46  ;;  %vm4681_vm10 = vnez %v4420_v4  ;;  %vm4682_vm2 = vnez %v4424_v9  ;;  %v4137_v59 = vpop.trf.xlu1  ;;  %v4728_v4 = vld [vmem:[#allocation13_spill] sm:$0xff] }
  0x89   :  { %806 = vmatprep.mubr.f32.mxu0 %v4676_v18  ;;  %895 = vmatprep.mubr.f32.mxu1 %v4676_v18 }
  0x8a   :  { %v703_v50 = vpop.trf.xlu0  ;;  %2333 = vmatprep.subr.msk.bf16.mxu0 %vm4677_vm3, %v4675_v46  ;;  %2349 = vmatprep.subr.msk.bf16.mxu1 %vm4678_vm4, %v4675_v46  ;;  %vm4687_vm3 = vnez %v4444_v21  ;;  %vm4688_vm4 = vnez %v4448_v27  ;;  %v4740_v21 = vld [vmem:[#allocation17_spill] sm:$0xff]  ;;  %v4744_v27 = vld [vmem:[#allocation18_spill] sm:$0xff] }
  0x8b   :  { %2090 = vmatmul.mubr.msk.f32.gmra.mrb[4].mxu0 %vm717_vm14, %v703_v50  ;;  %2110 = vmatmul.mubr.msk.f32.gmra.mrb[4].mxu1 %vm717_vm14, %v703_v50 }
  0x8c   :  { %2335 = vmatpush1.bf16.msk.msra.mxu0 %vm4679_vm12, %v4675_v46  ;;  %2351 = vmatpush1.bf16.msk.msra.mxu1 %vm4680_vm5, %v4675_v46  ;;  %vm4689_vm12 = vnez %v4452_v32  ;;  %vm4690_vm5 = vnez %v4456_v33  ;;  %v4161_v9 = vpop.trf.xlu1  ;;  %v4750_v32 = vld [vmem:[#allocation21_spill] sm:$0xff] }
  0x8d   :  { %812 = vmatprep.mubr.f32.mxu0 %v4676_v18  ;;  %901 = vmatprep.mubr.f32.mxu1 %v4676_v18 }
  0x8e   :  { %v704_v51 = vpop.trf.xlu0  ;;  %2337 = vmatprep.subr.msk.bf16.mxu0 %vm4681_vm10, %v4675_v46  ;;  %2353 = vmatprep.subr.msk.bf16.mxu1 %vm4682_vm2, %v4675_v46  ;;  %vm4691_vm10 = vnez %v4460_v36  ;;  %vm4692_vm2 = vnez %v4464_v37 }
  0x8f   :  { %2091 = vmatmul.mubr.msk.f32.gmra.mrb[6].mxu0 %vm717_vm14, %v704_v51  ;;  %2111 = vmatmul.mubr.msk.f32.gmra.mrb[6].mxu1 %vm717_vm14, %v704_v51 }
  0x90   :  { %2339 = vmatpush1.bf16.msk.msra.mxu0 %vm4683_vm8, %v4675_v46  ;;  %2355 = vmatpush1.bf16.msk.msra.mxu1 %vm4684_vm1, %v4675_v46  ;;  %vm4693_vm8 = vnez %v4468_v39  ;;  %vm4694_vm1 = vnez %v4472_v40  ;;  %v4187_v14 = vpop.trf.xlu1 }
  0x91   :  { %972 = vmatprep.mubr.f32.mxu0 %v4676_v18  ;;  %1061 = vmatprep.mubr.f32.mxu1 %v4676_v18 }
  0x92   :  { %2357 = vmatprep.subr.msk.bf16.mxu0 %vm4685_vm7, %v4675_v46  ;;  %2389 = vmatprep.subr.msk.bf16.mxu1 %vm4686_vm11, %v4675_v46  ;;  %vm4695_vm7 = vnez %v4476_v41  ;;  %vm4696_vm11 = vnez %v4480_v42 }
  0x93   :  { %2128 = vmatmul.mubr.msk.f32.vlgmr.msra.gmra.mrb[8].mxu0 %vm717_vm14, %v701_v23  ;;  %2148 = vmatmul.mubr.msk.f32.vlgmr.msra.gmra.mrb[8].mxu1 %vm717_vm14, %v701_v23 }
  0x94   :  { %2359 = vmatpush1.bf16.msk.msra.mxu0 %vm4687_vm3, %v4675_v46  ;;  %2391 = vmatpush1.bf16.msk.msra.mxu1 %vm4688_vm4, %v4675_v46  ;;  %vm4697_vm3 = vnez %v4484_v44  ;;  %vm4698_vm4 = vnez %v4488_v45 }
  0x95   :  { %978 = vmatprep.mubr.f32.mxu0 %v4676_v18  ;;  %1067 = vmatprep.mubr.f32.mxu1 %v4676_v18 }
  0x96   :  { %2361 = vmatprep.subr.msk.bf16.mxu0 %vm4689_vm12, %v4675_v46  ;;  %2393 = vmatprep.subr.msk.bf16.mxu1 %vm4690_vm5, %v4675_v46  ;;  %vm4699_vm12 = vnez %v4492_v47  ;;  %vm4700_vm5 = vnez %v4496_v48 }
  0x97   :  { %2129 = vmatmul.mubr.msk.f32.gmra.mrb[10].mxu0 %vm717_vm14, %v702_v3  ;;  %2149 = vmatmul.mubr.msk.f32.gmra.mrb[10].mxu1 %vm717_vm14, %v702_v3 }
  0x98   :  { %2363 = vmatpush1.bf16.msk.msra.mxu0 %vm4691_vm10, %v4675_v46  ;;  %2395 = vmatpush1.bf16.msk.msra.mxu1 %vm4692_vm2, %v4675_v46  ;;  %vm4701_vm10 = vnez %v4500_v52  ;;  %vm4702_vm2 = vnez %v4504_v57 }
  0x99   :  { %984 = vmatprep.mubr.f32.mxu0 %v4676_v18  ;;  %1073 = vmatprep.mubr.f32.mxu1 %v4676_v18 }
  0x9a   :  { %2365 = vmatprep.subr.msk.bf16.mxu0 %vm4693_vm8, %v4675_v46  ;;  %2397 = vmatprep.subr.msk.bf16.mxu1 %vm4694_vm1, %v4675_v46  ;;  %vm4704_vm8 = vnez %v4512_v12  ;;  %vm4705_vm1 = vnez %v4516_v15 }
  0x9b   :  { %2130 = vmatmul.mubr.msk.f32.gmra.mrb[12].mxu0 %vm717_vm14, %v703_v50  ;;  %2150 = vmatmul.mubr.msk.f32.gmra.mrb[12].mxu1 %vm717_vm14, %v703_v50 }
  0x9c   :  { %2367 = vmatpush1.bf16.msk.msra.mxu0 %vm4695_vm7, %v4675_v46  ;;  %2399 = vmatpush1.bf16.msk.msra.mxu1 %vm4696_vm11, %v4675_v46  ;;  %vm4706_vm7 = vnez %v4520_v38  ;;  %vm4707_vm11 = vnez %v4524_v43 }
  0x9d   :  { %990 = vmatprep.mubr.f32.mxu0 %v4676_v18  ;;  %1079 = vmatprep.mubr.f32.mxu1 %v4676_v18 }
  0x9e   :  { %2369 = vmatprep.subr.msk.bf16.mxu0 %vm4697_vm3, %v4675_v46  ;;  %2401 = vmatprep.subr.msk.bf16.mxu1 %vm4698_vm4, %v4675_v46  ;;  %vm4709_vm3 = vnez %v4708_v53  ;;  %vm4711_vm4 = vnez %v4710_v54 }
  0x9f   :  { %2131 = vmatmul.mubr.msk.f32.gmra.mrb[14].mxu0 %vm717_vm14, %v704_v51  ;;  %2151 = vmatmul.mubr.msk.f32.gmra.mrb[14].mxu1 %vm717_vm14, %v704_v51  ;;  %vm4703_vm14 = vnez %v4508_v1 }
  0xa0   :  { %2371 = vmatpush1.bf16.msk.msra.mxu0 %vm4699_vm12, %v4675_v46  ;;  %2403 = vmatpush1.bf16.msk.msra.mxu1 %vm4700_vm5, %v4675_v46  ;;  %vm4712_vm12 = vnez %v4538_v30  ;;  %vm4714_vm5 = vnez %v4713_v56  ;;  %v4720_v30 = vld [vmem:[#allocation9_spill] sm:$0xff] }
  0xa1   :  { %2373 = vmatprep.subr.msk.bf16.mxu0 %vm4701_vm10, %v4675_v46  ;;  %2405 = vmatprep.subr.msk.bf16.mxu1 %vm4702_vm2, %v4675_v46  ;;  %vm4716_vm10 = vnez %v4715_v58  ;;  %vm4717_vm2 = vnez %v4552_v2  ;;  %v4724_v2 = vld [vmem:[#allocation11_spill] sm:$0xff] }
  0xa2   :  { %1198 = vmatprep.mubr.f32.mxu0 %v4676_v18  ;;  %1287 = vmatprep.mubr.f32.mxu1 %v4676_v18 }
  0xa4   :  { %2375 = vmatpush1.bf16.msk.msra.mxu0 %vm4703_vm14, %v4675_v46  ;;  %2407 = vmatpush1.bf16.msk.msra.mxu1 %vm4704_vm8, %v4675_v46  ;;  %vm4718_vm14 = vnez %v4556_v49  ;;  %vm4719_vm8 = vnez %v4560_v25 }
  0xa5   :  { %2377 = vmatprep.subr.msk.bf16.mxu0 %vm4705_vm1, %v4675_v46  ;;  %2409 = vmatprep.subr.msk.bf16.mxu1 %vm4706_vm7, %v4675_v46  ;;  %vm4721_vm1 = vnez %v4720_v30  ;;  %vm4723_vm7 = vnez %v4574_v35 }
  0xa8   :  { %2379 = vmatpush1.bf16.msk.msra.mxu0 %vm4707_vm11, %v4675_v46  ;;  %2411 = vmatpush1.bf16.msk.msra.mxu1 %vm4709_vm3, %v4675_v46  ;;  %vm4725_vm11 = vnez %v4724_v2  ;;  %vm4729_vm3 = vnez %v4728_v4 }
  0xa9   :  { %2381 = vmatprep.subr.msk.bf16.mxu0 %vm4711_vm4, %v4675_v46  ;;  %2413 = vmatprep.subr.msk.bf16.mxu1 %vm4712_vm12, %v4675_v46  ;;  %vm4731_vm4 = vnez %v4599_v5  ;;  %vm4733_vm12 = vnez %v4732_v10 }
  0xac   :  { %2383 = vmatpush1.bf16.msk.msra.mxu0 %vm4714_vm5, %v4675_v46  ;;  %2415 = vmatpush1.bf16.msk.msra.mxu1 %vm4716_vm10, %v4675_v46  ;;  %vm4735_vm5 = vnez %v4734_v11  ;;  %vm4736_vm10 = vnez %v4613_v17 }
  0xad   :  { %2385 = vmatprep.subr.msk.bf16.mxu0 %vm4717_vm2, %v4675_v46  ;;  %2417 = vmatprep.subr.msk.bf16.mxu1 %vm4718_vm14, %v4675_v46  ;;  %vm4737_vm2 = vnez %v4617_v13  ;;  %vm361_vm14 = vcmp.eq.s32.totalorder %v3155_v62, %v3304_v24 }
  0xb0   :  { %2387 = vmatpush1.bf16.msk.msra.mxu0 %vm4719_vm8, %v4675_v46  ;;  %2419 = vmatpush1.bf16.msk.msra.mxu1 %vm4721_vm1, %v4675_v46  ;;  %vm369_vm8 = vcmp.eq.s32.totalorder %v3158_v63, %v3304_v24  ;;  %vm4739_vm1 = vnez %v4738_v20 }
  0xb1   :  { %2421 = vmatprep.subr.msk.bf16.mxu0 %vm3731_vm13, %v4675_v46  ;;  %2453 = vmatprep.subr.msk.bf16.mxu1 %vm4723_vm7, %v4675_v46  ;;  %vm4727_vm13 = vnez %v4726_v61  ;;  %vm4741_vm7 = vnez %v4740_v21 }
  0xb3   :  { %1199 = vmatmul.mubr.f32.vlgmr.msra.gmra.mrb[16].mxu0 %v4117_v55  ;;  %1288 = vmatmul.mubr.f32.vlgmr.msra.gmra.mrb[16].mxu1 %v4117_v55 }
  0xb4   :  { %2423 = vmatpush1.bf16.msk.msra.mxu0 %vm3754_vm15, %v4675_v46  ;;  %2455 = vmatpush1.bf16.msk.msra.mxu1 %vm4725_vm11, %v4675_v46  ;;  %vm4730_vm15 = vnez %v4595_v31  ;;  %vm363_vm11 = vcmp.eq.s32.totalorder %v3155_v62, %v3309_v26  ;;  %v4746_v62 = vld [vmem:[#allocation19_spill] sm:$0xff] }
  0xb5   :  { %1204 = vmatprep.mubr.f32.mxu0 %v4676_v18  ;;  %1293 = vmatprep.mubr.f32.mxu1 %v4676_v18 }
  0xb6   :  { %2425 = vmatprep.subr.msk.bf16.mxu0 %vm4727_vm13, %v4675_v46  ;;  %2457 = vmatprep.subr.msk.bf16.mxu1 %vm4729_vm3, %v4675_v46  ;;  %vm371_vm13 = vcmp.eq.s32.totalorder %v3158_v63, %v3309_v26  ;;  %vm4742_vm3 = vnez %v4631_v19  ;;  %v4748_v63 = vld [vmem:[#allocation20_spill] sm:$0xff] }
  0xb7   :  { %1205 = vmatmul.mubr.f32.gmra.mrb[18].mxu0 %v4137_v59  ;;  %1294 = vmatmul.mubr.f32.gmra.mrb[18].mxu1 %v4137_v59 }
  0xb8   :  { %2427 = vmatpush1.bf16.msk.msra.mxu0 %vm4730_vm15, %v4675_v46  ;;  %2459 = vmatpush1.bf16.msk.msra.mxu1 %vm4731_vm4, %v4675_v46  ;;  %vm4743_vm15 = vnez %v4635_v16  ;;  %vm2438_vm4 = vmpackc.low %vm369_vm8, %vm361_vm14  ;;  %vm387_vm14 = vcmp.eq.s32.totalorder %v3182_v6, %v3309_v26 }
  0xb9   :  { %1210 = vmatprep.mubr.f32.mxu0 %v4676_v18  ;;  %1299 = vmatprep.mubr.f32.mxu1 %v4676_v18 }
  0xba   :  { %2429 = vmatprep.subr.msk.bf16.mxu0 %vm4733_vm12, %v4675_v46  ;;  %2461 = vmatprep.subr.msk.bf16.mxu1 %vm4735_vm5, %v4675_v46  ;;  %vm4745_vm12 = vnez %v4744_v27  ;;  %vm4747_vm5 = vnez %v4746_v62 }
  0xbb   :  { %1211 = vmatmul.mubr.f32.gmra.mrb[20].mxu0 %v4161_v9  ;;  %1300 = vmatmul.mubr.f32.gmra.mrb[20].mxu1 %v4161_v9 }
  0xbc   :  { %2431 = vmatpush1.bf16.msk.msra.mxu0 %vm4736_vm10, %v4675_v46  ;;  %2463 = vmatpush1.bf16.msk.msra.mxu1 %vm4737_vm2, %v4675_v46  ;;  %vm2470_vm10 = vmpackc.low %vm371_vm13, %vm363_vm11  ;;  %vm377_vm2 = vcmp.eq.s32.totalorder %v3161_v0, %v3304_v24  ;;  %vm4749_vm11 = vnez %v4748_v63  ;;  %vm4751_vm13 = vnez %v4750_v32 }
  0xbd   :  { %1216 = vmatprep.mubr.f32.mxu0 %v4676_v18  ;;  %1305 = vmatprep.mubr.f32.mxu1 %v4676_v18 }
  0xbe   :  { %2433 = vmatprep.subr.msk.bf16.mxu0 %vm4739_vm1, %v4675_v46  ;;  %2465 = vmatprep.subr.msk.bf16.mxu1 %vm4741_vm7, %v4675_v46  ;;  %vm385_vm1 = vcmp.eq.s32.totalorder %v3182_v6, %v3304_v24  ;;  %vm379_vm7 = vcmp.eq.s32.totalorder %v3161_v0, %v3309_v26  ;;  %v4752_v0 = vld [vmem:[#allocation22_spill] sm:$0xff] }
  0xbf   :  { %1217 = vmatmul.mubr.f32.gmra.mrb[22].mxu0 %v4187_v14  ;;  %1306 = vmatmul.mubr.f32.gmra.mrb[22].mxu1 %v4187_v14  ;;  %vm2442_vm8 = vmpackc.low %vm385_vm1, %vm377_vm2  ;;  %vm4753_vm2 = vnez %v4752_v0 }
  0xc0   :  { %2435 = vmatpush1.bf16.msk.msra.mxu0 %vm4742_vm3, %v4675_v46  ;;  %2467 = vmatpush1.bf16.msk.msra.mxu1 %vm4743_vm15, %v4675_v46  ;;  %vm2474_vm3 = vmpackc.low %vm387_vm14, %vm379_vm7  ;;  %vm393_vm15 = vcmp.eq.s32.totalorder %v3185_v7, %v3304_v24  ;;  %vm409_vm7 = vcmp.eq.s32.totalorder %v3322_v28, %v3304_v24  ;;  %vm417_vm14 = vcmp.eq.s32.totalorder %v3325_v29, %v3304_v24 }
  0xc1   :  { %2437 = vmatprep.subr.msk.bf16.mxu0 %vm4745_vm12, %v4675_v46  ;;  %2469 = vmatprep.subr.msk.bf16.mxu1 %vm4747_vm5, %v4675_v46  ;;  %vm401_vm12 = vcmp.eq.s32.totalorder %v3188_v8, %v3304_v24  ;;  %vm403_vm5 = vcmp.eq.s32.totalorder %v3188_v8, %v3309_v26 }
  0xc2   :  { %1376 = vmatprep.mubr.f32.mxu0 %v4676_v18  ;;  %1465 = vmatprep.mubr.f32.mxu1 %v4676_v18 }
  0xc4   :  { %2439 = vmatpush1.bf16.msk.msra.mxu0 %vm2438_vm4, %v4675_v46  ;;  %2471 = vmatpush1.bf16.msk.msra.mxu1 %vm2470_vm10, %v4675_v46  ;;  %vm395_vm4 = vcmp.eq.s32.totalorder %v3185_v7, %v3309_v26  ;;  %vm2446_vm10 = vmpackc.low %vm401_vm12, %vm393_vm15 }
  0xc5   :  { %2441 = vmatprep.subr.msk.bf16.mxu0 %vm4749_vm11, %v4675_v46  ;;  %2473 = vmatprep.subr.msk.bf16.mxu1 %vm4751_vm13, %v4675_v46  ;;  %vm2478_vm1 = vmpackc.low %vm403_vm5, %vm395_vm4  ;;  %vm419_vm11 = vcmp.eq.s32.totalorder %v3325_v29, %v3309_v26 }
  0xc6   :  { %vm2450_vm13 = vmpackc.low %vm417_vm14, %vm409_vm7 }
  0xc8   :  { %2443 = vmatpush1.bf16.msk.msra.mxu0 %vm2442_vm8, %v4675_v46  ;;  %2475 = vmatpush1.bf16.msk.msra.mxu1 %vm2474_vm3, %v4675_v46  ;;  %vm411_vm8 = vcmp.eq.s32.totalorder %v3322_v28, %v3309_v26 }
  0xc9   :  { %2445 = vmatprep.subr.msk.bf16.mxu0 %vm4753_vm2, %v4675_v46  ;;  %2477 = vmatprep.subr.msk.bf16.mxu1 %vm3941_vm0, %v4675_v46  ;;  %vm2482_vm0 = vmpackc.low %vm419_vm11, %vm411_vm8 }
  0xcc   :  { %2447 = vmatpush1.bf16.msk.msra.mxu0 %vm2446_vm10, %v4675_v46  ;;  %2479 = vmatpush1.bf16.msk.msra.mxu1 %vm2478_vm1, %v4675_v46 }
  0xcd   :  { %2449 = vmatprep.subr.msk.bf16.mxu0 %vm3951_vm6, %v4675_v46  ;;  %2481 = vmatprep.subr.msk.bf16.mxu1 %vm3961_vm9, %v4675_v46  ;;  %vm1522_vm6 = vcmask 261120  }
  0xd0   :  { %2451 = vmatpush1.bf16.msk.msra.mxu0 %vm2450_vm13, %v4675_v46  ;;  %2483 = vmatpush1.bf16.msk.msra.mxu1 %vm2482_vm0, %v4675_v46 }
  0xd3   :  { %1377 = vmatmul.mubr.f32.vlgmr.msra.gmra.mrb[24].mxu0 %v4117_v55  ;;  %1466 = vmatmul.mubr.f32.vlgmr.msra.gmra.mrb[24].mxu1 %v4117_v55 }
  0xd4   :  { %1382 = vmatprep.mubr.f32.mxu0 %v4676_v18  ;;  %1471 = vmatprep.mubr.f32.mxu1 %v4676_v18 }
  0xd7   :  { %1383 = vmatmul.mubr.f32.gmra.mrb[26].mxu0 %v4137_v59  ;;  %1472 = vmatmul.mubr.f32.gmra.mrb[26].mxu1 %v4137_v59 }
  0xd8   :  { %1388 = vmatprep.mubr.f32.mxu0 %v4676_v18  ;;  %1477 = vmatprep.mubr.f32.mxu1 %v4676_v18 }
  0xdb   :  { %1389 = vmatmul.mubr.f32.gmra.mrb[28].mxu0 %v4161_v9  ;;  %1478 = vmatmul.mubr.f32.gmra.mrb[28].mxu1 %v4161_v9 }
  0xdc   :  { %1394 = vmatprep.mubr.f32.mxu0 %v4676_v18  ;;  %1483 = vmatprep.mubr.f32.mxu1 %v4676_v18 }
  0xdf   :  { %1395 = vmatmul.mubr.f32.gmra.mrb[30].mxu0 %v4187_v14  ;;  %1484 = vmatmul.mubr.f32.gmra.mrb[30].mxu1 %v4187_v14 }
  0xe0   :  { %1590 = vmatprep.mubr.f32.mxu0 %v4676_v18  ;;  %1661 = vmatprep.mubr.f32.mxu1 %v4676_v18 }
 0x156   :  { %v796_v8 = vpop.f32.mrb[0].mxu0  ;;  %v885_v24 = vpop.f32.mrb[0].mxu1 }
 0x157   :  { %v798_v26 = vpop.f32.mrb[1].mxu0  ;;  %v887_v28 = vpop.f32.mrb[1].mxu1 }
 0x15a   :  { %v802_v29 = vpop.f32.mrb[2].mxu0  ;;  %v891_v33 = vpop.f32.mrb[2].mxu1 }
 0x15b   :  { %v804_v36 = vpop.f32.mrb[3].mxu0  ;;  %v893_v37 = vpop.f32.mrb[3].mxu1 }
 0x15e   :  { %v808_v39 = vpop.f32.mrb[4].mxu0  ;;  %v897_v40 = vpop.f32.mrb[4].mxu1 }
 0x15f   :  { %v810_v41 = vpop.f32.mrb[5].mxu0  ;;  %v899_v42 = vpop.f32.mrb[5].mxu1 }
 0x162   :  { %v814_v44 = vpop.f32.mrb[6].mxu0  ;;  %v903_v45 = vpop.f32.mrb[6].mxu1 }
 0x163   :  { %v816_v47 = vpop.f32.mrb[7].mxu0  ;;  %v905_v48 = vpop.f32.mrb[7].mxu1 }
 0x166   :  { %v4287_v52 = vpop.f32.mrb[8].mxu0  ;;  %v4289_v57 = vpop.f32.mrb[8].mxu1 }
 0x167   :  { %v4291_v1 = vpop.f32.mrb[9].mxu0  ;;  %v4293_v12 = vpop.f32.mrb[9].mxu1 }
 0x16a   :  { %v4295_v15 = vpop.f32.mrb[10].mxu0  ;;  %v4297_v38 = vpop.f32.mrb[10].mxu1 }
 0x16b   :  { %v4299_v43 = vpop.f32.mrb[11].mxu0  ;;  %v4301_v49 = vpop.f32.mrb[11].mxu1 }
 0x16e   :  { %v4303_v25 = vpop.f32.mrb[12].mxu0  ;;  %v4305_v31 = vpop.f32.mrb[12].mxu1 }
 0x16f   :  { %v4307_v34 = vpop.f32.mrb[13].mxu0  ;;  %v4309_v35 = vpop.f32.mrb[13].mxu1 }
 0x172   :  { %v4311_v5 = vpop.f32.mrb[14].mxu0  ;;  %v4313_v13 = vpop.f32.mrb[14].mxu1 }
 0x173   :  { %v4315_v16 = vpop.f32.mrb[15].mxu0  ;;  %v4317_v17 = vpop.f32.mrb[15].mxu1 }
 0x186   :  { %v1200_v19 = vpop.f32.mrb[16].mxu0  ;;  %v1289_v22 = vpop.f32.mrb[16].mxu1 }
 0x187   :  { %v1490_v23 = vmul.f32 %v1200_v19, %v796_v8  ;;  %v1492_v46 = vmul.f32 %v1289_v22, %v885_v24  ;;  %v1202_v3 = vpop.f32.mrb[17].mxu0  ;;  %v1291_v50 = vpop.f32.mrb[17].mxu1 }
 0x188   :  { %v1491_v51 = vmul.f32 %v1202_v3, %v798_v26  ;;  %v1493_v53 = vmul.f32 %v1291_v50, %v887_v28 }
 0x18a   :  { %v1206_v54 = vpop.f32.mrb[18].mxu0  ;;  %v1295_v55 = vpop.f32.mrb[18].mxu1 }
 0x18b   :  { %v1498_v56 = vmul.f32 %v1206_v54, %v802_v29  ;;  %v1500_v58 = vmul.f32 %v1295_v55, %v891_v33  ;;  %v1208_v30 = vpop.f32.mrb[19].mxu0  ;;  %v1297_v59 = vpop.f32.mrb[19].mxu1 }
 0x18c   :  { %v1499_v60 = vmul.f32 %v1208_v30, %v804_v36  ;;  %v1501_v2 = vmul.f32 %v1297_v59, %v893_v37 }
 0x18d   :  { %v2486_v61 = vpack.c.bf16 %v1498_v56, %v1490_v23  ;;  %v2494_v4 = vpack.c.bf16 %v1500_v58, %v1492_v46 }
 0x18e   :  { %v2484_v9 = vpack.c.bf16 %v1499_v60, %v1491_v51  ;;  %v2492_v10 = vpack.c.bf16 %v1501_v2, %v1493_v53  ;;  %v1212_v11 = vpop.f32.mrb[20].mxu0  ;;  %v1301_v14 = vpop.f32.mrb[20].mxu1 }
 0x18f   :  { %v1506_v20 = vmul.f32 %v1212_v11, %v808_v39  ;;  %v1508_v21 = vmul.f32 %v1301_v14, %v897_v40  ;;  %v1214_v27 = vpop.f32.mrb[21].mxu0  ;;  %v1303_v62 = vpop.f32.mrb[21].mxu1  ;;  %v2578_v40 = vmov 1.0  }
 0x190   :  { %v1507_v63 = vmul.f32 %v1214_v27, %v810_v41  ;;  %v1509_v32 = vmul.f32 %v1303_v62, %v899_v42  ;;  %2485 = vmatprep.subr.bf16.mxu0 %v2484_v9  ;;  %2493 = vmatprep.subr.bf16.mxu1 %v2492_v10 }
 0x191   :  { %2487 = vmatpush1.bf16.msra.mxu0 %v2486_v61  ;;  %2495 = vmatpush1.bf16.msra.mxu1 %v2494_v4 }
 0x192   :  { %v1218_v0 = vpop.f32.mrb[22].mxu0  ;;  %v1307_v6 = vpop.f32.mrb[22].mxu1 }
 0x193   :  { %v1514_v7 = vmul.f32 %v1218_v0, %v814_v44  ;;  %v1516_v8 = vmul.f32 %v1307_v6, %v903_v45  ;;  %v1220_v24 = vpop.f32.mrb[23].mxu0  ;;  %v1309_v26 = vpop.f32.mrb[23].mxu1 }
 0x194   :  { %v1515_v28 = vmul.f32 %v1220_v24, %v816_v47  ;;  %v1517_v29 = vmul.f32 %v1309_v26, %v905_v48 }
 0x195   :  { %v2490_v33 = vpack.c.bf16 %v1514_v7, %v1506_v20  ;;  %v2498_v36 = vpack.c.bf16 %v1516_v8, %v1508_v21 }
 0x196   :  { %v2488_v37 = vpack.c.bf16 %v1515_v28, %v1507_v63  ;;  %v2496_v39 = vpack.c.bf16 %v1517_v29, %v1509_v32 }
 0x198   :  { %2489 = vmatprep.subr.bf16.mxu0 %v2488_v37  ;;  %2497 = vmatprep.subr.bf16.mxu1 %v2496_v39 }
 0x199   :  { %2491 = vmatpush1.bf16.msra.mxu0 %v2490_v33  ;;  %2499 = vmatpush1.bf16.msra.mxu1 %v2498_v36 }
 0x19c   :  { %2280 = vmatmul.mubr.msk.f32.vlgmr.msra.gmra.mrb[32].mxu0 %vm1522_vm6, %v2578_v40  ;;  %2281 = vmatmul.mubr.msk.f32.vlgmr.msra.gmra.mrb[32].mxu1 %vm1522_vm6, %v2578_v40 }
 0x19d   :  { %1732 = vmatprep.mubr.f32.mxu0 %v4676_v18  ;;  %1803 = vmatprep.mubr.f32.mxu1 %v4676_v18 }
 0x1a6   :  { %v1378_v41 = vpop.f32.mrb[24].mxu0  ;;  %v1467_v42 = vpop.f32.mrb[24].mxu1 }
 0x1a7   :  { %v1494_v44 = vmul.f32 %v1378_v41, %v4287_v52  ;;  %v1496_v45 = vmul.f32 %v1467_v42, %v4289_v57  ;;  %v1380_v47 = vpop.f32.mrb[25].mxu0  ;;  %v1469_v48 = vpop.f32.mrb[25].mxu1 }
 0x1a8   :  { %v1495_v19 = vmul.f32 %v1380_v47, %v4291_v1  ;;  %v1497_v22 = vmul.f32 %v1469_v48, %v4293_v12 }
 0x1aa   :  { %v1384_v23 = vpop.f32.mrb[26].mxu0  ;;  %v1473_v46 = vpop.f32.mrb[26].mxu1 }
 0x1ab   :  { %v1502_v3 = vmul.f32 %v1384_v23, %v4295_v15  ;;  %v1504_v50 = vmul.f32 %v1473_v46, %v4297_v38  ;;  %v1386_v51 = vpop.f32.mrb[27].mxu0  ;;  %v1475_v18 = vpop.f32.mrb[27].mxu1 }
 0x1ac   :  { %v1503_v53 = vmul.f32 %v1386_v51, %v4299_v43  ;;  %v1505_v52 = vmul.f32 %v1475_v18, %v4301_v49 }
 0x1ad   :  { %v2502_v54 = vpack.c.bf16 %v1502_v3, %v1494_v44  ;;  %v2510_v57 = vpack.c.bf16 %v1504_v50, %v1496_v45 }
 0x1ae   :  { %v2500_v55 = vpack.c.bf16 %v1503_v53, %v1495_v19  ;;  %v2508_v56 = vpack.c.bf16 %v1505_v52, %v1497_v22  ;;  %v1390_v58 = vpop.f32.mrb[28].mxu0  ;;  %v1479_v1 = vpop.f32.mrb[28].mxu1 }
 0x1af   :  { %v1510_v12 = vmul.f32 %v1390_v58, %v4303_v25  ;;  %v1512_v30 = vmul.f32 %v1479_v1, %v4305_v31  ;;  %v1392_v59 = vpop.f32.mrb[29].mxu0  ;;  %v1481_v15 = vpop.f32.mrb[29].mxu1 }
 0x1b0   :  { %v1511_v38 = vmul.f32 %v1392_v59, %v4307_v34  ;;  %v1513_v60 = vmul.f32 %v1481_v15, %v4309_v35  ;;  %2501 = vmatprep.subr.bf16.mxu0 %v2500_v55  ;;  %2509 = vmatprep.subr.bf16.mxu1 %v2508_v56 }
 0x1b1   :  { %2503 = vmatpush1.bf16.msra.mxu0 %v2502_v54  ;;  %2511 = vmatpush1.bf16.msra.mxu1 %v2510_v57 }
 0x1b2   :  { %v1396_v43 = vpop.f32.mrb[30].mxu0  ;;  %v1485_v49 = vpop.f32.mrb[30].mxu1 }
 0x1b3   :  { %v1518_v2 = vmul.f32 %v1396_v43, %v4311_v5  ;;  %v1520_v61 = vmul.f32 %v1485_v49, %v4313_v13  ;;  %v1398_v4 = vpop.f32.mrb[31].mxu0  ;;  %v1487_v25 = vpop.f32.mrb[31].mxu1 }
 0x1b4   :  { %v1519_v31 = vmul.f32 %v1398_v4, %v4315_v16  ;;  %v1521_v9 = vmul.f32 %v1487_v25, %v4317_v17 }
 0x1b5   :  { %v2506_v10 = vpack.c.bf16 %v1518_v2, %v1510_v12  ;;  %v2514_v34 = vpack.c.bf16 %v1520_v61, %v1512_v30 }
 0x1b6   :  { %v2504_v11 = vpack.c.bf16 %v1519_v31, %v1511_v38  ;;  %v2512_v35 = vpack.c.bf16 %v1521_v9, %v1513_v60 }
 0x1b8   :  { %2505 = vmatprep.subr.bf16.mxu0 %v2504_v11  ;;  %2513 = vmatprep.subr.bf16.mxu1 %v2512_v35 }
 0x1b9   :  { %2507 = vmatpush1.bf16.msra.mxu0 %v2506_v10  ;;  %2515 = vmatpush1.bf16.msra.mxu1 %v2514_v34 }
 0x1bc   :  { %2282 = vmatmul.mubr.msk.f32.vlgmr.msra.gmra.mrb[34].mxu0 %vm1522_vm6, %v2578_v40  ;;  %2283 = vmatmul.mubr.msk.f32.vlgmr.msra.gmra.mrb[34].mxu1 %vm1522_vm6, %v2578_v40 }
 0x26f   :  { %v1592_v5 = vpop.f32.mrb[32].mxu0  ;;  %v1663_v13 = vpop.f32.mrb[32].mxu1 }
 0x270   :  { %v2284_v14 = vmul.f32 -1.442695, %v1592_v5  ;;  %v2286_v20 = vmul.f32 -1.442695, %v1663_v13  ;;  %v1594_v21 = vpop.f32.mrb[33].mxu0  ;;  %v1665_v16 = vpop.f32.mrb[33].mxu1 }
 0x271   :  { %v2285_v27 = vmul.f32 -1.442695, %v1594_v21  ;;  %v2287_v17 = vmul.f32 -1.442695, %v1665_v16 }
 0x272   :  { %2520 = vpow2.f32 %v2284_v14 }
 0x273   :  { %2522 = vpow2.f32 %v2286_v20 }
 0x274   :  { %2524 = vpow2.f32 %v2285_v27 }
 0x275   :  { %2526 = vpow2.f32 %v2287_v17 }
 0x27c   :  { %v2521_v62 = vpop.eup %2520 }
 0x27d   :  { %v2523_v63 = vpop.eup %2522  ;;  %v1834_v32 = vadd.f32 1.0, %v2521_v62 }
 0x27e   :  { %v2525_v0 = vpop.eup %2524  ;;  %v1836_v6 = vadd.f32 1.0, %v2523_v63 }
 0x27f   :  { %v2527_v7 = vpop.eup %2526  ;;  %2528 = vrcp.f32 %v1834_v32  ;;  %v1835_v8 = vadd.f32 1.0, %v2525_v0 }
 0x280   :  { %2530 = vrcp.f32 %v1836_v6  ;;  %v1837_v24 = vadd.f32 1.0, %v2527_v7 }
 0x281   :  { %2532 = vrcp.f32 %v1835_v8 }
 0x282   :  { %2534 = vrcp.f32 %v1837_v24 }
 0x289   :  { %v2529_v26 = vpop.eup %2528 }
 0x28a   :  { %v2531_v28 = vpop.eup %2530  ;;  %1858 = vst [vmem:[#allocation2] sm:$0x1] %v2529_v26 }
 0x28b   :  { %v2533_v29 = vpop.eup %2532  ;;  %1860 = vst [vmem:[#allocation2 + $0x2] sm:$0x1] %v2531_v28 }
 0x28c   :  { %v2535_v33 = vpop.eup %2534  ;;  %1859 = vst [vmem:[#allocation2 + $0x1] sm:$0x1] %v2533_v29 }
 0x28d   :  { %1861 = vst [vmem:[#allocation2 + $0x3] sm:$0x1] %v2535_v33 }
 0x28f   :  { %v1734_v36 = vpop.f32.mrb[34].mxu0  ;;  %v1805_v37 = vpop.f32.mrb[34].mxu1 }
 0x290   :  { %v2288_v39 = vmul.f32 -1.442695, %v1734_v36  ;;  %v2290_v40 = vmul.f32 -1.442695, %v1805_v37  ;;  %v1736_v41 = vpop.f32.mrb[35].mxu0  ;;  %v1807_v42 = vpop.f32.mrb[35].mxu1 }
 0x291   :  { %v2289_v44 = vmul.f32 -1.442695, %v1736_v41  ;;  %v2291_v45 = vmul.f32 -1.442695, %v1807_v42 }
 0x292   :  { %2536 = vpow2.f32 %v2288_v39 }
 0x293   :  { %2538 = vpow2.f32 %v2290_v40 }
 0x294   :  { %2540 = vpow2.f32 %v2289_v44 }
 0x295   :  { %2542 = vpow2.f32 %v2291_v45 }
 0x29c   :  { %v2537_v47 = vpop.eup %2536 }
 0x29d   :  { %v2539_v48 = vpop.eup %2538  ;;  %v1838_v19 = vadd.f32 1.0, %v2537_v47 }
 0x29e   :  { %v2541_v22 = vpop.eup %2540  ;;  %v1840_v23 = vadd.f32 1.0, %v2539_v48 }
 0x29f   :  { %v2543_v46 = vpop.eup %2542  ;;  %2544 = vrcp.f32 %v1838_v19  ;;  %v1839_v3 = vadd.f32 1.0, %v2541_v22 }
 0x2a0   :  { %2546 = vrcp.f32 %v1840_v23  ;;  %v1841_v50 = vadd.f32 1.0, %v2543_v46 }
 0x2a1   :  { %2548 = vrcp.f32 %v1839_v3 }
 0x2a2   :  { %2550 = vrcp.f32 %v1841_v50 }
 0x2a9   :  { %v2545_v51 = vpop.eup %2544 }
 0x2aa   :  { %v2547_v18 = vpop.eup %2546  ;;  %1862 = vst [vmem:[#allocation2 + $0x4] sm:$0x1] %v2545_v51 }
 0x2ab   :  { %v2549_v53 = vpop.eup %2548  ;;  %1864 = vst [vmem:[#allocation2 + $0x6] sm:$0x1] %v2547_v18 }
 0x2ac   :  { %v2551_v52 = vpop.eup %2550  ;;  %1863 = vst [vmem:[#allocation2 + $0x5] sm:$0x1] %v2549_v53 }
 0x2ad   :  { %1865 = vst [vmem:[#allocation2 + $0x7] sm:$0x1] %v2551_v52 }
 0x2ae   :  { %2563 = shalt.err (!%p2560_p4)
}
 0x2af   :  { %s2564_s14 = scalar_lea.hbm %s4357_s4, 128 }
 0x2b0   :  { %p2565_p5 = scmp.ne.s32.totalorder %s4357_s4, %s2564_s14  ;;  %p2568_p6 = scmp.lt.u32.totalorder %s2564_s14, %s4357_s4 }
 0x2b2   :  { %p2570_p7 = pnand %p2568_p6, %p2565_p5 }
 0x2b4   :  { %2573 = shalt.err (!%p2570_p7)
}
 0x2b5   :  { %1875 = dma.vmem_to_hbm [thread:$0]  %s1873_s10, 128, %s4357_s4, [#allocation3]  }
 0x2b6   :  { %2574 = dma.done.wait [#allocation3], 128  }
 0x2b7   :  { %2575 = vsyncadd [#allocation3], 4294967168 }
 0x2b8   :  { %1879 = vsyncpa [#allocation3], 1 }

</bundles_post_ra>
